<compile_context>
chip_gen: v7x
topology: tpu7x:2x2x1
jax: 0.10.0
libtpu: 0.0.40
codegen_flags: <defaults>
</compile_context>

<pallas_src>
import math

import jax
import jax.numpy as jnp
from jax import lax
from jax.experimental import pallas as pl
from jax.experimental.pallas import tpu as pltpu


def _make_gru_recurrence_kernel(time_block):
    """Builds the sequential GRU-recurrence kernel for a fixed time block T."""

    def kernel(gi_ref, bhn_ref, whh_hbm, hout_ref, h_ref, whh_vmem, whh_sem):
        # gi_ref   : (T, 3, tb, H) f32  precomputed input gates (r, z, n);
        #                                b_ih and the r/z parts of b_hh folded in.
        # bhn_ref  : (1, H)        f32  b_hh of the n gate (multiplied by r,
        #                                so it cannot be folded).
        # whh_hbm  : (3, H, H)     bf16 hidden->gate weights (transposed), in HBM.
        # hout_ref : (T, tb, H)    f32  per-step hidden states (output slab).
        # h_ref    : (tb, H)       f32  hidden-state carry across grid steps.
        # whh_vmem : (3, H, H)     bf16 single-buffered VMEM copy of W_hh.
        # whh_sem  : DMA semaphore for the one-shot weight copy.
        t_blk = pl.program_id(1)

        @pl.when(t_blk == 0)
        def _():
            # Single-buffered weight residency: copy W_hh from HBM once per
            # batch tile instead of letting BlockSpec double-buffer it.
            cp = pltpu.make_async_copy(whh_hbm, whh_vmem, whh_sem)
            cp.start()
            cp.wait()
            h_ref[...] = jnp.zeros_like(h_ref)          # init_hidden: zeros

        bhn = bhn_ref[...]                               # (1, H)

        def step(i, h):
            g = gi_ref[i]                                # (3, tb, H) f32
            hb = h.astype(whh_vmem.dtype)                # bf16 operands, f32 accum
            gh_r = jnp.dot(hb, whh_vmem[0], preferred_element_type=jnp.float32)
            gh_z = jnp.dot(hb, whh_vmem[1], preferred_element_type=jnp.float32)
            gh_n = jnp.dot(hb, whh_vmem[2], preferred_element_type=jnp.float32)
            r = jax.nn.sigmoid(g[0] + gh_r)              # b_ir + b_hr already in g[0]
            z = jax.nn.sigmoid(g[1] + gh_z)              # b_iz + b_hz already in g[1]
            n = jnp.tanh(g[2] + r * (gh_n + bhn))        # b_in in g[2]; b_hn separate
            h_new = (1.0 - z) * n + z * h
            hout_ref[i] = h_new
            return h_new

        h_ref[...] = lax.fori_loop(0, time_block, step, h_ref[...], unroll=True)

    return kernel


def vanilla_gru_forward(x, params, *, time_block=None, compute_dtype=jnp.bfloat16):
    """Forward pass of VanillaGRU.

    x: (batch, seq, input_size) float32.
    Returns an (seq, batch, output_size) float32 array; out[t] equals the t-th
    element of the Python list returned by the PyTorch module's forward.
    """
    B, S, I = x.shape
    w_ih = params["w_ih"]      # (3H, I)  PyTorch GRUCell layout (r, z, n)
    w_hh = params["w_hh"]      # (3H, H)
    b_ih = params["b_ih"]      # (3H,)
    b_hh = params["b_hh"]      # (3H,)
    w_out = params["w_out"]    # (O, H)
    b_out = params["b_out"]    # (O,)
    H = w_hh.shape[1]
    O = w_out.shape[0]

    if time_block is None:
        time_block = min(S, 16)
    T = time_block
    n_time_blocks = pl.cdiv(S, T)
    S_pad = n_time_blocks * T

    # ---- Hoisted input projection: one big matmul, M = S*B (parallel) -------
    # Fold b_hh of the r and z gates into the precomputed bias; b_hh_n must
    # stay separate because the recurrence multiplies it by r.
    b_fold = jnp.concatenate([b_ih[: 2 * H] + b_hh[: 2 * H], b_ih[2 * H:]])
    x_flat = jnp.transpose(x, (1, 0, 2)).reshape(S * B, I)
    gi_flat = jnp.dot(x_flat.astype(compute_dtype),
                      jnp.transpose(w_ih).astype(compute_dtype),
                      preferred_element_type=jnp.float32) + b_fold       # (S*B, 3H) f32
    # Lane-aligned, gate-on-its-own-axis layout: (S, 3, B, H).
    gi = gi_flat.reshape(S, B, 3, H).transpose(0, 2, 1, 3)
    if S_pad != S:
        gi = jnp.pad(gi, ((0, S_pad - S), (0, 0), (0, 0), (0, 0)))

    # Hidden->gate weights: (3, H, H), transposed so the kernel does h @ whh[g].
    whh = jnp.transpose(w_hh.reshape(3, H, H), (0, 2, 1)).astype(compute_dtype)
    bhn = b_hh[2 * H:].reshape(1, H).astype(jnp.float32)

    kernel = _make_gru_recurrence_kernel(T)
    h_all = pl.pallas_call(
        kernel,
        out_shape=jax.ShapeDtypeStruct((S_pad, B, H), jnp.float32),
        grid_spec=pltpu.PrefetchScalarGridSpec(
            num_scalar_prefetch=0,
            # (batch tiles, time blocks): the leading "parallel" axis is the
            # hook for megacore batch sharding on v7x when B is large enough
            # to tile; here B is small so it has extent 1.
            grid=(1, n_time_blocks),
            in_specs=[
                pl.BlockSpec((T, 3, B, H), lambda b, t: (t, 0, b, 0)),   # gi
                pl.BlockSpec((1, H), lambda b, t: (0, 0)),               # b_hh_n
                pl.BlockSpec(memory_space=pl.ANY),                       # W_hh in HBM
            ],
            out_specs=pl.BlockSpec((T, B, H), lambda b, t: (t, b, 0)),   # h_t slab
            scratch_shapes=[
                pltpu.VMEM((B, H), jnp.float32),        # hidden carry
                pltpu.VMEM((3, H, H), compute_dtype),   # single-buffered W_hh
                pltpu.SemaphoreType.DMA,                # weight-copy semaphore
            ],
        ),
        compiler_params=pltpu.CompilerParams(
            dimension_semantics=("parallel", "arbitrary"),  # recurrence is serial in t
            vmem_limit_bytes=32 * 1024 * 1024,
        ),
    )(gi, bhn, whh)

    # ---- Deferred output Linear: one big matmul, M = S*B (parallel) ---------
    h_flat = h_all[:S].reshape(S * B, H)
    out_flat = jnp.dot(h_flat.astype(compute_dtype),
                       jnp.transpose(w_out).astype(compute_dtype),
                       preferred_element_type=jnp.float32) + b_out
    return out_flat.reshape(S, B, O)


def make_params(key, input_size, hidden_size, output_size):
    """Deterministic init mimicking PyTorch default U(-1/sqrt(H), 1/sqrt(H))."""
    ks = jax.random.split(key, 6)
    kcell = 1.0 / math.sqrt(hidden_size)
    kout = 1.0 / math.sqrt(hidden_size)
    return {
        "w_ih": jax.random.uniform(ks[0], (3 * hidden_size, input_size),
                                   jnp.float32, -kcell, kcell),
        "w_hh": jax.random.uniform(ks[1], (3 * hidden_size, hidden_size),
                                   jnp.float32, -kcell, kcell),
        "b_ih": jax.random.uniform(ks[2], (3 * hidden_size,),
                                   jnp.float32, -kcell, kcell),
        "b_hh": jax.random.uniform(ks[3], (3 * hidden_size,),
                                   jnp.float32, -kcell, kcell),
        "w_out": jax.random.uniform(ks[4], (output_size, hidden_size),
                                    jnp.float32, -kout, kout),
        "b_out": jax.random.uniform(ks[5], (output_size,),
                                    jnp.float32, -kout, kout),
    }


def _reference_forward(x, params):
    """Pure-JAX f32 reference of the PyTorch semantics (sanity check)."""
    B, S, I = x.shape
    H = params["w_hh"].shape[1]
    h = jnp.zeros((B, H), jnp.float32)
    outs = []
    for t in range(S):
        xt = x[:, t, :]
        gi = xt @ params["w_ih"].T + params["b_ih"]
        gh = h @ params["w_hh"].T + params["b_hh"]
        i_r, i_z, i_n = jnp.split(gi, 3, axis=1)
        h_r, h_z, h_n = jnp.split(gh, 3, axis=1)
        r = jax.nn.sigmoid(i_r + h_r)
        z = jax.nn.sigmoid(i_z + h_z)
        n = jnp.tanh(i_n + r * h_n)
        h = (1.0 - z) * n + z * h
        outs.append(h @ params["w_out"].T + params["b_out"])
    return jnp.stack(outs, axis=0)   # (S, B, O)


if __name__ == "__main__":
    batch, seq, input_size, hidden_size, output_size = 2, 8, 16, 32, 12

    key = jax.random.PRNGKey(0)
    kx, kp = jax.random.split(key)
    x = jax.random.normal(kx, (batch, seq, input_size), jnp.float32)
    params = make_params(kp, input_size, hidden_size, output_size)

    fwd = jax.jit(vanilla_gru_forward)
    out = jax.block_until_ready(fwd(x, params))          # (S, B, O)

    ref = _reference_forward(x, params)
    assert out.shape == (seq, batch, output_size)
    # bf16 matmul operands (f32 accumulation) -> loosened tolerance vs the
    # pure-f32 reference, per the performance-review correctness note.
    assert jnp.allclose(out, ref, atol=5e-2, rtol=5e-2), "mismatch vs reference"

    print("KERNEL_OK")
</pallas_src>

<mosaic_0001>
module attributes {stable_mosaic.version = 11 : i64} {
  func.func @kernel(%arg0: i32, %arg1: i32, %arg2: memref<8x3x2x32xf32, #tpu.memory_space<vmem>>, %arg3: memref<1x32xf32, #tpu.memory_space<vmem>>, %arg4: memref<3x32x32xbf16, #tpu.memory_space<any>>, %arg5: memref<8x2x32xf32, #tpu.memory_space<vmem>>, %arg6: memref<2x32xf32, #tpu.memory_space<vmem>>, %arg7: memref<3x32x32xbf16, #tpu.memory_space<vmem>>, %arg8: memref<!tpu.dma_semaphore, #tpu.memory_space<semaphore_mem>>) attributes {dimension_semantics = [#tpu.dimension_semantics<parallel>, #tpu.dimension_semantics<arbitrary>], iteration_bounds = array<i64: 1, 1>, scalar_prefetch = 0 : i64, scratch_operands = 3 : i64, tpu.core_type = #tpu.core_type<tc>, window_params = [{transform_indices = @transform_0, window_bounds = array<i64: 8, 3, 2, 32>}, {pipeline_mode = #tpu.pipeline_mode<synchronous>, transform_indices = @transform_1, window_bounds = array<i64: 1, 32>}, {}, {transform_indices = @transform_3, window_bounds = array<i64: 8, 2, 32>}]} {
    %c0_i32 = arith.constant 0 : i32
    %0 = arith.cmpi eq, %arg1, %c0_i32 : i32
    %1 = arith.extui %0 : i1 to i32
    %c0_i32_0 = arith.constant 0 : i32
    %2 = arith.cmpi ne, %1, %c0_i32_0 : i32
    scf.if %2 {
      tpu.enqueue_dma source(%arg4 : memref<3x32x32xbf16, #tpu.memory_space<any>>) target(%arg7 : memref<3x32x32xbf16, #tpu.memory_space<vmem>>) target_semaphore(%arg8 : memref<!tpu.dma_semaphore, #tpu.memory_space<semaphore_mem>>)
      tpu.wait_dma2 semaphore(%arg8 : memref<!tpu.dma_semaphore, #tpu.memory_space<semaphore_mem>>) src(%arg4 : memref<3x32x32xbf16, #tpu.memory_space<any>>) dst(%arg7 : memref<3x32x32xbf16, #tpu.memory_space<vmem>>)
      %cst_164 = arith.constant 0.000000e+00 : f32
      %366 = vector.broadcast %cst_164 : f32 to vector<2x32xf32>
      %c0_165 = arith.constant 0 : index
      %c0_166 = arith.constant 0 : index
      %367 = vector.load %arg6[%c0_165, %c0_166] : memref<2x32xf32, #tpu.memory_space<vmem>>, vector<2x32xf32>
      tpu.vector_store %arg6[%c0_165, %c0_166], %366 {strides = array<i32>} : memref<2x32xf32, #tpu.memory_space<vmem>>, vector<2x32xf32>,
    } else {
    }
    %c0 = arith.constant 0 : index
    %c0_1 = arith.constant 0 : index
    %3 = vector.load %arg3[%c0, %c0_1] : memref<1x32xf32, #tpu.memory_space<vmem>>, vector<1x32xf32>
    %c0_2 = arith.constant 0 : index
    %c0_3 = arith.constant 0 : index
    %4 = vector.load %arg6[%c0_2, %c0_3] : memref<2x32xf32, #tpu.memory_space<vmem>>, vector<2x32xf32>
    %c0_i32_4 = arith.constant 0 : i32
    %5 = arith.index_cast %c0_i32_4 : i32 to index
    %c0_5 = arith.constant 0 : index
    %c0_6 = arith.constant 0 : index
    %c0_7 = arith.constant 0 : index
    %6 = vector.load %arg2[%5, %c0_5, %c0_6, %c0_7] : memref<8x3x2x32xf32, #tpu.memory_space<vmem>>, vector<1x3x2x32xf32>
    %7 = vector.shape_cast %6 : vector<1x3x2x32xf32> to vector<3x2x32xf32>
    %8 = arith.truncf %4 : vector<2x32xf32> to vector<2x32xbf16>
    %c0_8 = arith.constant 0 : index
    %c0_9 = arith.constant 0 : index
    %c0_10 = arith.constant 0 : index
    %9 = vector.load %arg7[%c0_8, %c0_9, %c0_10] : memref<3x32x32xbf16, #tpu.memory_space<vmem>>, vector<1x32x32xbf16>
    %10 = vector.shape_cast %9 : vector<1x32x32xbf16> to vector<32x32xbf16>
    %cst = arith.constant dense<0.000000e+00> : vector<2x32xf32>
    %11 = tpu.matmul %8, %10, %cst {dimension_numbers = #tpu.dot_dimension_numbers<[1], [0], [0], [1], [0, 0, 1, 1], [], []>} : vector<2x32xbf16>, vector<32x32xbf16>, vector<2x32xf32> -> vector<2x32xf32>
    %c1 = arith.constant 1 : index
    %c0_11 = arith.constant 0 : index
    %c0_12 = arith.constant 0 : index
    %12 = vector.load %arg7[%c1, %c0_11, %c0_12] : memref<3x32x32xbf16, #tpu.memory_space<vmem>>, vector<1x32x32xbf16>
    %13 = vector.shape_cast %12 : vector<1x32x32xbf16> to vector<32x32xbf16>
    %cst_13 = arith.constant dense<0.000000e+00> : vector<2x32xf32>
    %14 = tpu.matmul %8, %13, %cst_13 {dimension_numbers = #tpu.dot_dimension_numbers<[1], [0], [0], [1], [0, 0, 1, 1], [], []>} : vector<2x32xbf16>, vector<32x32xbf16>, vector<2x32xf32> -> vector<2x32xf32>
    %c2 = arith.constant 2 : index
    %c0_14 = arith.constant 0 : index
    %c0_15 = arith.constant 0 : index
    %15 = vector.load %arg7[%c2, %c0_14, %c0_15] : memref<3x32x32xbf16, #tpu.memory_space<vmem>>, vector<1x32x32xbf16>
    %16 = vector.shape_cast %15 : vector<1x32x32xbf16> to vector<32x32xbf16>
    %cst_16 = arith.constant dense<0.000000e+00> : vector<2x32xf32>
    %17 = tpu.matmul %8, %16, %cst_16 {dimension_numbers = #tpu.dot_dimension_numbers<[1], [0], [0], [1], [0, 0, 1, 1], [], []>} : vector<2x32xbf16>, vector<32x32xbf16>, vector<2x32xf32> -> vector<2x32xf32>
    %18 = vector.extract_strided_slice %7 {offsets = [0, 0, 0], sizes = [1, 2, 32], strides = [1, 1, 1]} : vector<3x2x32xf32> to vector<1x2x32xf32>
    %19 = vector.shape_cast %18 : vector<1x2x32xf32> to vector<2x32xf32>
    %20 = arith.addf %19, %11 : vector<2x32xf32>
    %21 = arith.negf %20 : vector<2x32xf32>
    %22 = math.exp %21 : vector<2x32xf32>
    %cst_17 = arith.constant 1.000000e+00 : f32
    %23 = vector.broadcast %cst_17 : f32 to vector<2x32xf32>
    %24 = arith.addf %23, %22 : vector<2x32xf32>
    %25 = arith.divf %23, %24 : vector<2x32xf32>
    %26 = vector.extract_strided_slice %7 {offsets = [1, 0, 0], sizes = [1, 2, 32], strides = [1, 1, 1]} : vector<3x2x32xf32> to vector<1x2x32xf32>
    %27 = vector.shape_cast %26 : vector<1x2x32xf32> to vector<2x32xf32>
    %28 = arith.addf %27, %14 : vector<2x32xf32>
    %29 = arith.negf %28 : vector<2x32xf32>
    %30 = math.exp %29 : vector<2x32xf32>
    %cst_18 = arith.constant 1.000000e+00 : f32
    %31 = vector.broadcast %cst_18 : f32 to vector<2x32xf32>
    %32 = arith.addf %31, %30 : vector<2x32xf32>
    %33 = arith.divf %31, %32 : vector<2x32xf32>
    %34 = vector.extract_strided_slice %7 {offsets = [2, 0, 0], sizes = [1, 2, 32], strides = [1, 1, 1]} : vector<3x2x32xf32> to vector<1x2x32xf32>
    %35 = vector.shape_cast %34 : vector<1x2x32xf32> to vector<2x32xf32>
    %36 = vector.broadcast %3 : vector<1x32xf32> to vector<2x32xf32>
    %37 = arith.addf %17, %36 : vector<2x32xf32>
    %38 = arith.mulf %25, %37 : vector<2x32xf32>
    %39 = arith.addf %35, %38 : vector<2x32xf32>
    %40 = math.tanh %39 : vector<2x32xf32>
    %cst_19 = arith.constant 1.000000e+00 : f32
    %41 = vector.broadcast %cst_19 : f32 to vector<2x32xf32>
    %42 = arith.subf %41, %33 : vector<2x32xf32>
    %43 = arith.mulf %42, %40 : vector<2x32xf32>
    %44 = arith.mulf %33, %4 : vector<2x32xf32>
    %45 = arith.addf %43, %44 : vector<2x32xf32>
    %46 = arith.index_cast %c0_i32_4 : i32 to index
    %c0_20 = arith.constant 0 : index
    %c0_21 = arith.constant 0 : index
    %47 = vector.load %arg5[%46, %c0_20, %c0_21] : memref<8x2x32xf32, #tpu.memory_space<vmem>>, vector<1x2x32xf32>
    %48 = vector.shape_cast %47 : vector<1x2x32xf32> to vector<2x32xf32>
    %49 = vector.shape_cast %45 : vector<2x32xf32> to vector<1x2x32xf32>
    tpu.vector_store %arg5[%46, %c0_20, %c0_21], %49 {strides = array<i32>} : memref<8x2x32xf32, #tpu.memory_space<vmem>>, vector<1x2x32xf32>,
    %c1_i32 = arith.constant 1 : i32
    %50 = arith.index_cast %c1_i32 : i32 to index
    %c0_22 = arith.constant 0 : index
    %c0_23 = arith.constant 0 : index
    %c0_24 = arith.constant 0 : index
    %51 = vector.load %arg2[%50, %c0_22, %c0_23, %c0_24] : memref<8x3x2x32xf32, #tpu.memory_space<vmem>>, vector<1x3x2x32xf32>
    %52 = vector.shape_cast %51 : vector<1x3x2x32xf32> to vector<3x2x32xf32>
    %53 = arith.truncf %45 : vector<2x32xf32> to vector<2x32xbf16>
    %c0_25 = arith.constant 0 : index
    %c0_26 = arith.constant 0 : index
    %c0_27 = arith.constant 0 : index
    %54 = vector.load %arg7[%c0_25, %c0_26, %c0_27] : memref<3x32x32xbf16, #tpu.memory_space<vmem>>, vector<1x32x32xbf16>
    %55 = vector.shape_cast %54 : vector<1x32x32xbf16> to vector<32x32xbf16>
    %cst_28 = arith.constant dense<0.000000e+00> : vector<2x32xf32>
    %56 = tpu.matmul %53, %55, %cst_28 {dimension_numbers = #tpu.dot_dimension_numbers<[1], [0], [0], [1], [0, 0, 1, 1], [], []>} : vector<2x32xbf16>, vector<32x32xbf16>, vector<2x32xf32> -> vector<2x32xf32>
    %c1_29 = arith.constant 1 : index
    %c0_30 = arith.constant 0 : index
    %c0_31 = arith.constant 0 : index
    %57 = vector.load %arg7[%c1_29, %c0_30, %c0_31] : memref<3x32x32xbf16, #tpu.memory_space<vmem>>, vector<1x32x32xbf16>
    %58 = vector.shape_cast %57 : vector<1x32x32xbf16> to vector<32x32xbf16>
    %cst_32 = arith.constant dense<0.000000e+00> : vector<2x32xf32>
    %59 = tpu.matmul %53, %58, %cst_32 {dimension_numbers = #tpu.dot_dimension_numbers<[1], [0], [0], [1], [0, 0, 1, 1], [], []>} : vector<2x32xbf16>, vector<32x32xbf16>, vector<2x32xf32> -> vector<2x32xf32>
    %c2_33 = arith.constant 2 : index
    %c0_34 = arith.constant 0 : index
    %c0_35 = arith.constant 0 : index
    %60 = vector.load %arg7[%c2_33, %c0_34, %c0_35] : memref<3x32x32xbf16, #tpu.memory_space<vmem>>, vector<1x32x32xbf16>
    %61 = vector.shape_cast %60 : vector<1x32x32xbf16> to vector<32x32xbf16>
    %cst_36 = arith.constant dense<0.000000e+00> : vector<2x32xf32>
    %62 = tpu.matmul %53, %61, %cst_36 {dimension_numbers = #tpu.dot_dimension_numbers<[1], [0], [0], [1], [0, 0, 1, 1], [], []>} : vector<2x32xbf16>, vector<32x32xbf16>, vector<2x32xf32> -> vector<2x32xf32>
    %63 = vector.extract_strided_slice %52 {offsets = [0, 0, 0], sizes = [1, 2, 32], strides = [1, 1, 1]} : vector<3x2x32xf32> to vector<1x2x32xf32>
    %64 = vector.shape_cast %63 : vector<1x2x32xf32> to vector<2x32xf32>
    %65 = arith.addf %64, %56 : vector<2x32xf32>
    %66 = arith.negf %65 : vector<2x32xf32>
    %67 = math.exp %66 : vector<2x32xf32>
    %cst_37 = arith.constant 1.000000e+00 : f32
    %68 = vector.broadcast %cst_37 : f32 to vector<2x32xf32>
    %69 = arith.addf %68, %67 : vector<2x32xf32>
    %70 = arith.divf %68, %69 : vector<2x32xf32>
    %71 = vector.extract_strided_slice %52 {offsets = [1, 0, 0], sizes = [1, 2, 32], strides = [1, 1, 1]} : vector<3x2x32xf32> to vector<1x2x32xf32>
    %72 = vector.shape_cast %71 : vector<1x2x32xf32> to vector<2x32xf32>
    %73 = arith.addf %72, %59 : vector<2x32xf32>
    %74 = arith.negf %73 : vector<2x32xf32>
    %75 = math.exp %74 : vector<2x32xf32>
    %cst_38 = arith.constant 1.000000e+00 : f32
    %76 = vector.broadcast %cst_38 : f32 to vector<2x32xf32>
    %77 = arith.addf %76, %75 : vector<2x32xf32>
    %78 = arith.divf %76, %77 : vector<2x32xf32>
    %79 = vector.extract_strided_slice %52 {offsets = [2, 0, 0], sizes = [1, 2, 32], strides = [1, 1, 1]} : vector<3x2x32xf32> to vector<1x2x32xf32>
    %80 = vector.shape_cast %79 : vector<1x2x32xf32> to vector<2x32xf32>
    %81 = vector.broadcast %3 : vector<1x32xf32> to vector<2x32xf32>
    %82 = arith.addf %62, %81 : vector<2x32xf32>
    %83 = arith.mulf %70, %82 : vector<2x32xf32>
    %84 = arith.addf %80, %83 : vector<2x32xf32>
    %85 = math.tanh %84 : vector<2x32xf32>
    %cst_39 = arith.constant 1.000000e+00 : f32
    %86 = vector.broadcast %cst_39 : f32 to vector<2x32xf32>
    %87 = arith.subf %86, %78 : vector<2x32xf32>
    %88 = arith.mulf %87, %85 : vector<2x32xf32>
    %89 = arith.mulf %78, %45 : vector<2x32xf32>
    %90 = arith.addf %88, %89 : vector<2x32xf32>
    %91 = arith.index_cast %c1_i32 : i32 to index
    %c0_40 = arith.constant 0 : index
    %c0_41 = arith.constant 0 : index
    %92 = vector.load %arg5[%91, %c0_40, %c0_41] : memref<8x2x32xf32, #tpu.memory_space<vmem>>, vector<1x2x32xf32>
    %93 = vector.shape_cast %92 : vector<1x2x32xf32> to vector<2x32xf32>
    %94 = vector.shape_cast %90 : vector<2x32xf32> to vector<1x2x32xf32>
    tpu.vector_store %arg5[%91, %c0_40, %c0_41], %94 {strides = array<i32>} : memref<8x2x32xf32, #tpu.memory_space<vmem>>, vector<1x2x32xf32>,
    %c2_i32 = arith.constant 2 : i32
    %95 = arith.index_cast %c2_i32 : i32 to index
    %c0_42 = arith.constant 0 : index
    %c0_43 = arith.constant 0 : index
    %c0_44 = arith.constant 0 : index
    %96 = vector.load %arg2[%95, %c0_42, %c0_43, %c0_44] : memref<8x3x2x32xf32, #tpu.memory_space<vmem>>, vector<1x3x2x32xf32>
    %97 = vector.shape_cast %96 : vector<1x3x2x32xf32> to vector<3x2x32xf32>
    %98 = arith.truncf %90 : vector<2x32xf32> to vector<2x32xbf16>
    %c0_45 = arith.constant 0 : index
    %c0_46 = arith.constant 0 : index
    %c0_47 = arith.constant 0 : index
    %99 = vector.load %arg7[%c0_45, %c0_46, %c0_47] : memref<3x32x32xbf16, #tpu.memory_space<vmem>>, vector<1x32x32xbf16>
    %100 = vector.shape_cast %99 : vector<1x32x32xbf16> to vector<32x32xbf16>
    %cst_48 = arith.constant dense<0.000000e+00> : vector<2x32xf32>
    %101 = tpu.matmul %98, %100, %cst_48 {dimension_numbers = #tpu.dot_dimension_numbers<[1], [0], [0], [1], [0, 0, 1, 1], [], []>} : vector<2x32xbf16>, vector<32x32xbf16>, vector<2x32xf32> -> vector<2x32xf32>
    %c1_49 = arith.constant 1 : index
    %c0_50 = arith.constant 0 : index
    %c0_51 = arith.constant 0 : index
    %102 = vector.load %arg7[%c1_49, %c0_50, %c0_51] : memref<3x32x32xbf16, #tpu.memory_space<vmem>>, vector<1x32x32xbf16>
    %103 = vector.shape_cast %102 : vector<1x32x32xbf16> to vector<32x32xbf16>
    %cst_52 = arith.constant dense<0.000000e+00> : vector<2x32xf32>
    %104 = tpu.matmul %98, %103, %cst_52 {dimension_numbers = #tpu.dot_dimension_numbers<[1], [0], [0], [1], [0, 0, 1, 1], [], []>} : vector<2x32xbf16>, vector<32x32xbf16>, vector<2x32xf32> -> vector<2x32xf32>
    %c2_53 = arith.constant 2 : index
    %c0_54 = arith.constant 0 : index
    %c0_55 = arith.constant 0 : index
    %105 = vector.load %arg7[%c2_53, %c0_54, %c0_55] : memref<3x32x32xbf16, #tpu.memory_space<vmem>>, vector<1x32x32xbf16>
    %106 = vector.shape_cast %105 : vector<1x32x32xbf16> to vector<32x32xbf16>
    %cst_56 = arith.constant dense<0.000000e+00> : vector<2x32xf32>
    %107 = tpu.matmul %98, %106, %cst_56 {dimension_numbers = #tpu.dot_dimension_numbers<[1], [0], [0], [1], [0, 0, 1, 1], [], []>} : vector<2x32xbf16>, vector<32x32xbf16>, vector<2x32xf32> -> vector<2x32xf32>
    %108 = vector.extract_strided_slice %97 {offsets = [0, 0, 0], sizes = [1, 2, 32], strides = [1, 1, 1]} : vector<3x2x32xf32> to vector<1x2x32xf32>
    %109 = vector.shape_cast %108 : vector<1x2x32xf32> to vector<2x32xf32>
    %110 = arith.addf %109, %101 : vector<2x32xf32>
    %111 = arith.negf %110 : vector<2x32xf32>
    %112 = math.exp %111 : vector<2x32xf32>
    %cst_57 = arith.constant 1.000000e+00 : f32
    %113 = vector.broadcast %cst_57 : f32 to vector<2x32xf32>
    %114 = arith.addf %113, %112 : vector<2x32xf32>
    %115 = arith.divf %113, %114 : vector<2x32xf32>
    %116 = vector.extract_strided_slice %97 {offsets = [1, 0, 0], sizes = [1, 2, 32], strides = [1, 1, 1]} : vector<3x2x32xf32> to vector<1x2x32xf32>
    %117 = vector.shape_cast %116 : vector<1x2x32xf32> to vector<2x32xf32>
    %118 = arith.addf %117, %104 : vector<2x32xf32>
    %119 = arith.negf %118 : vector<2x32xf32>
    %120 = math.exp %119 : vector<2x32xf32>
    %cst_58 = arith.constant 1.000000e+00 : f32
    %121 = vector.broadcast %cst_58 : f32 to vector<2x32xf32>
    %122 = arith.addf %121, %120 : vector<2x32xf32>
    %123 = arith.divf %121, %122 : vector<2x32xf32>
    %124 = vector.extract_strided_slice %97 {offsets = [2, 0, 0], sizes = [1, 2, 32], strides = [1, 1, 1]} : vector<3x2x32xf32> to vector<1x2x32xf32>
    %125 = vector.shape_cast %124 : vector<1x2x32xf32> to vector<2x32xf32>
    %126 = vector.broadcast %3 : vector<1x32xf32> to vector<2x32xf32>
    %127 = arith.addf %107, %126 : vector<2x32xf32>
    %128 = arith.mulf %115, %127 : vector<2x32xf32>
    %129 = arith.addf %125, %128 : vector<2x32xf32>
    %130 = math.tanh %129 : vector<2x32xf32>
    %cst_59 = arith.constant 1.000000e+00 : f32
    %131 = vector.broadcast %cst_59 : f32 to vector<2x32xf32>
    %132 = arith.subf %131, %123 : vector<2x32xf32>
    %133 = arith.mulf %132, %130 : vector<2x32xf32>
    %134 = arith.mulf %123, %90 : vector<2x32xf32>
    %135 = arith.addf %133, %134 : vector<2x32xf32>
    %136 = arith.index_cast %c2_i32 : i32 to index
    %c0_60 = arith.constant 0 : index
    %c0_61 = arith.constant 0 : index
    %137 = vector.load %arg5[%136, %c0_60, %c0_61] : memref<8x2x32xf32, #tpu.memory_space<vmem>>, vector<1x2x32xf32>
    %138 = vector.shape_cast %137 : vector<1x2x32xf32> to vector<2x32xf32>
    %139 = vector.shape_cast %135 : vector<2x32xf32> to vector<1x2x32xf32>
    tpu.vector_store %arg5[%136, %c0_60, %c0_61], %139 {strides = array<i32>} : memref<8x2x32xf32, #tpu.memory_space<vmem>>, vector<1x2x32xf32>,
    %c3_i32 = arith.constant 3 : i32
    %140 = arith.index_cast %c3_i32 : i32 to index
    %c0_62 = arith.constant 0 : index
    %c0_63 = arith.constant 0 : index
    %c0_64 = arith.constant 0 : index
    %141 = vector.load %arg2[%140, %c0_62, %c0_63, %c0_64] : memref<8x3x2x32xf32, #tpu.memory_space<vmem>>, vector<1x3x2x32xf32>
    %142 = vector.shape_cast %141 : vector<1x3x2x32xf32> to vector<3x2x32xf32>
    %143 = arith.truncf %135 : vector<2x32xf32> to vector<2x32xbf16>
    %c0_65 = arith.constant 0 : index
    %c0_66 = arith.constant 0 : index
    %c0_67 = arith.constant 0 : index
    %144 = vector.load %arg7[%c0_65, %c0_66, %c0_67] : memref<3x32x32xbf16, #tpu.memory_space<vmem>>, vector<1x32x32xbf16>
    %145 = vector.shape_cast %144 : vector<1x32x32xbf16> to vector<32x32xbf16>
    %cst_68 = arith.constant dense<0.000000e+00> : vector<2x32xf32>
    %146 = tpu.matmul %143, %145, %cst_68 {dimension_numbers = #tpu.dot_dimension_numbers<[1], [0], [0], [1], [0, 0, 1, 1], [], []>} : vector<2x32xbf16>, vector<32x32xbf16>, vector<2x32xf32> -> vector<2x32xf32>
    %c1_69 = arith.constant 1 : index
    %c0_70 = arith.constant 0 : index
    %c0_71 = arith.constant 0 : index
    %147 = vector.load %arg7[%c1_69, %c0_70, %c0_71] : memref<3x32x32xbf16, #tpu.memory_space<vmem>>, vector<1x32x32xbf16>
    %148 = vector.shape_cast %147 : vector<1x32x32xbf16> to vector<32x32xbf16>
    %cst_72 = arith.constant dense<0.000000e+00> : vector<2x32xf32>
    %149 = tpu.matmul %143, %148, %cst_72 {dimension_numbers = #tpu.dot_dimension_numbers<[1], [0], [0], [1], [0, 0, 1, 1], [], []>} : vector<2x32xbf16>, vector<32x32xbf16>, vector<2x32xf32> -> vector<2x32xf32>
    %c2_73 = arith.constant 2 : index
    %c0_74 = arith.constant 0 : index
    %c0_75 = arith.constant 0 : index
    %150 = vector.load %arg7[%c2_73, %c0_74, %c0_75] : memref<3x32x32xbf16, #tpu.memory_space<vmem>>, vector<1x32x32xbf16>
    %151 = vector.shape_cast %150 : vector<1x32x32xbf16> to vector<32x32xbf16>
    %cst_76 = arith.constant dense<0.000000e+00> : vector<2x32xf32>
    %152 = tpu.matmul %143, %151, %cst_76 {dimension_numbers = #tpu.dot_dimension_numbers<[1], [0], [0], [1], [0, 0, 1, 1], [], []>} : vector<2x32xbf16>, vector<32x32xbf16>, vector<2x32xf32> -> vector<2x32xf32>
    %153 = vector.extract_strided_slice %142 {offsets = [0, 0, 0], sizes = [1, 2, 32], strides = [1, 1, 1]} : vector<3x2x32xf32> to vector<1x2x32xf32>
    %154 = vector.shape_cast %153 : vector<1x2x32xf32> to vector<2x32xf32>
    %155 = arith.addf %154, %146 : vector<2x32xf32>
    %156 = arith.negf %155 : vector<2x32xf32>
    %157 = math.exp %156 : vector<2x32xf32>
    %cst_77 = arith.constant 1.000000e+00 : f32
    %158 = vector.broadcast %cst_77 : f32 to vector<2x32xf32>
    %159 = arith.addf %158, %157 : vector<2x32xf32>
    %160 = arith.divf %158, %159 : vector<2x32xf32>
    %161 = vector.extract_strided_slice %142 {offsets = [1, 0, 0], sizes = [1, 2, 32], strides = [1, 1, 1]} : vector<3x2x32xf32> to vector<1x2x32xf32>
    %162 = vector.shape_cast %161 : vector<1x2x32xf32> to vector<2x32xf32>
    %163 = arith.addf %162, %149 : vector<2x32xf32>
    %164 = arith.negf %163 : vector<2x32xf32>
    %165 = math.exp %164 : vector<2x32xf32>
    %cst_78 = arith.constant 1.000000e+00 : f32
    %166 = vector.broadcast %cst_78 : f32 to vector<2x32xf32>
    %167 = arith.addf %166, %165 : vector<2x32xf32>
    %168 = arith.divf %166, %167 : vector<2x32xf32>
    %169 = vector.extract_strided_slice %142 {offsets = [2, 0, 0], sizes = [1, 2, 32], strides = [1, 1, 1]} : vector<3x2x32xf32> to vector<1x2x32xf32>
    %170 = vector.shape_cast %169 : vector<1x2x32xf32> to vector<2x32xf32>
    %171 = vector.broadcast %3 : vector<1x32xf32> to vector<2x32xf32>
    %172 = arith.addf %152, %171 : vector<2x32xf32>
    %173 = arith.mulf %160, %172 : vector<2x32xf32>
    %174 = arith.addf %170, %173 : vector<2x32xf32>
    %175 = math.tanh %174 : vector<2x32xf32>
    %cst_79 = arith.constant 1.000000e+00 : f32
    %176 = vector.broadcast %cst_79 : f32 to vector<2x32xf32>
    %177 = arith.subf %176, %168 : vector<2x32xf32>
    %178 = arith.mulf %177, %175 : vector<2x32xf32>
    %179 = arith.mulf %168, %135 : vector<2x32xf32>
    %180 = arith.addf %178, %179 : vector<2x32xf32>
    %181 = arith.index_cast %c3_i32 : i32 to index
    %c0_80 = arith.constant 0 : index
    %c0_81 = arith.constant 0 : index
    %182 = vector.load %arg5[%181, %c0_80, %c0_81] : memref<8x2x32xf32, #tpu.memory_space<vmem>>, vector<1x2x32xf32>
    %183 = vector.shape_cast %182 : vector<1x2x32xf32> to vector<2x32xf32>
    %184 = vector.shape_cast %180 : vector<2x32xf32> to vector<1x2x32xf32>
    tpu.vector_store %arg5[%181, %c0_80, %c0_81], %184 {strides = array<i32>} : memref<8x2x32xf32, #tpu.memory_space<vmem>>, vector<1x2x32xf32>,
    %c4_i32 = arith.constant 4 : i32
    %185 = arith.index_cast %c4_i32 : i32 to index
    %c0_82 = arith.constant 0 : index
    %c0_83 = arith.constant 0 : index
    %c0_84 = arith.constant 0 : index
    %186 = vector.load %arg2[%185, %c0_82, %c0_83, %c0_84] : memref<8x3x2x32xf32, #tpu.memory_space<vmem>>, vector<1x3x2x32xf32>
    %187 = vector.shape_cast %186 : vector<1x3x2x32xf32> to vector<3x2x32xf32>
    %188 = arith.truncf %180 : vector<2x32xf32> to vector<2x32xbf16>
    %c0_85 = arith.constant 0 : index
    %c0_86 = arith.constant 0 : index
    %c0_87 = arith.constant 0 : index
    %189 = vector.load %arg7[%c0_85, %c0_86, %c0_87] : memref<3x32x32xbf16, #tpu.memory_space<vmem>>, vector<1x32x32xbf16>
    %190 = vector.shape_cast %189 : vector<1x32x32xbf16> to vector<32x32xbf16>
    %cst_88 = arith.constant dense<0.000000e+00> : vector<2x32xf32>
    %191 = tpu.matmul %188, %190, %cst_88 {dimension_numbers = #tpu.dot_dimension_numbers<[1], [0], [0], [1], [0, 0, 1, 1], [], []>} : vector<2x32xbf16>, vector<32x32xbf16>, vector<2x32xf32> -> vector<2x32xf32>
    %c1_89 = arith.constant 1 : index
    %c0_90 = arith.constant 0 : index
    %c0_91 = arith.constant 0 : index
    %192 = vector.load %arg7[%c1_89, %c0_90, %c0_91] : memref<3x32x32xbf16, #tpu.memory_space<vmem>>, vector<1x32x32xbf16>
    %193 = vector.shape_cast %192 : vector<1x32x32xbf16> to vector<32x32xbf16>
    %cst_92 = arith.constant dense<0.000000e+00> : vector<2x32xf32>
    %194 = tpu.matmul %188, %193, %cst_92 {dimension_numbers = #tpu.dot_dimension_numbers<[1], [0], [0], [1], [0, 0, 1, 1], [], []>} : vector<2x32xbf16>, vector<32x32xbf16>, vector<2x32xf32> -> vector<2x32xf32>
    %c2_93 = arith.constant 2 : index
    %c0_94 = arith.constant 0 : index
    %c0_95 = arith.constant 0 : index
    %195 = vector.load %arg7[%c2_93, %c0_94, %c0_95] : memref<3x32x32xbf16, #tpu.memory_space<vmem>>, vector<1x32x32xbf16>
    %196 = vector.shape_cast %195 : vector<1x32x32xbf16> to vector<32x32xbf16>
    %cst_96 = arith.constant dense<0.000000e+00> : vector<2x32xf32>
    %197 = tpu.matmul %188, %196, %cst_96 {dimension_numbers = #tpu.dot_dimension_numbers<[1], [0], [0], [1], [0, 0, 1, 1], [], []>} : vector<2x32xbf16>, vector<32x32xbf16>, vector<2x32xf32> -> vector<2x32xf32>
    %198 = vector.extract_strided_slice %187 {offsets = [0, 0, 0], sizes = [1, 2, 32], strides = [1, 1, 1]} : vector<3x2x32xf32> to vector<1x2x32xf32>
    %199 = vector.shape_cast %198 : vector<1x2x32xf32> to vector<2x32xf32>
    %200 = arith.addf %199, %191 : vector<2x32xf32>
    %201 = arith.negf %200 : vector<2x32xf32>
    %202 = math.exp %201 : vector<2x32xf32>
    %cst_97 = arith.constant 1.000000e+00 : f32
    %203 = vector.broadcast %cst_97 : f32 to vector<2x32xf32>
    %204 = arith.addf %203, %202 : vector<2x32xf32>
    %205 = arith.divf %203, %204 : vector<2x32xf32>
    %206 = vector.extract_strided_slice %187 {offsets = [1, 0, 0], sizes = [1, 2, 32], strides = [1, 1, 1]} : vector<3x2x32xf32> to vector<1x2x32xf32>
    %207 = vector.shape_cast %206 : vector<1x2x32xf32> to vector<2x32xf32>
    %208 = arith.addf %207, %194 : vector<2x32xf32>
    %209 = arith.negf %208 : vector<2x32xf32>
    %210 = math.exp %209 : vector<2x32xf32>
    %cst_98 = arith.constant 1.000000e+00 : f32
    %211 = vector.broadcast %cst_98 : f32 to vector<2x32xf32>
    %212 = arith.addf %211, %210 : vector<2x32xf32>
    %213 = arith.divf %211, %212 : vector<2x32xf32>
    %214 = vector.extract_strided_slice %187 {offsets = [2, 0, 0], sizes = [1, 2, 32], strides = [1, 1, 1]} : vector<3x2x32xf32> to vector<1x2x32xf32>
    %215 = vector.shape_cast %214 : vector<1x2x32xf32> to vector<2x32xf32>
    %216 = vector.broadcast %3 : vector<1x32xf32> to vector<2x32xf32>
    %217 = arith.addf %197, %216 : vector<2x32xf32>
    %218 = arith.mulf %205, %217 : vector<2x32xf32>
    %219 = arith.addf %215, %218 : vector<2x32xf32>
    %220 = math.tanh %219 : vector<2x32xf32>
    %cst_99 = arith.constant 1.000000e+00 : f32
    %221 = vector.broadcast %cst_99 : f32 to vector<2x32xf32>
    %222 = arith.subf %221, %213 : vector<2x32xf32>
    %223 = arith.mulf %222, %220 : vector<2x32xf32>
    %224 = arith.mulf %213, %180 : vector<2x32xf32>
    %225 = arith.addf %223, %224 : vector<2x32xf32>
    %226 = arith.index_cast %c4_i32 : i32 to index
    %c0_100 = arith.constant 0 : index
    %c0_101 = arith.constant 0 : index
    %227 = vector.load %arg5[%226, %c0_100, %c0_101] : memref<8x2x32xf32, #tpu.memory_space<vmem>>, vector<1x2x32xf32>
    %228 = vector.shape_cast %227 : vector<1x2x32xf32> to vector<2x32xf32>
    %229 = vector.shape_cast %225 : vector<2x32xf32> to vector<1x2x32xf32>
    tpu.vector_store %arg5[%226, %c0_100, %c0_101], %229 {strides = array<i32>} : memref<8x2x32xf32, #tpu.memory_space<vmem>>, vector<1x2x32xf32>,
    %c5_i32 = arith.constant 5 : i32
    %230 = arith.index_cast %c5_i32 : i32 to index
    %c0_102 = arith.constant 0 : index
    %c0_103 = arith.constant 0 : index
    %c0_104 = arith.constant 0 : index
    %231 = vector.load %arg2[%230, %c0_102, %c0_103, %c0_104] : memref<8x3x2x32xf32, #tpu.memory_space<vmem>>, vector<1x3x2x32xf32>
    %232 = vector.shape_cast %231 : vector<1x3x2x32xf32> to vector<3x2x32xf32>
    %233 = arith.truncf %225 : vector<2x32xf32> to vector<2x32xbf16>
    %c0_105 = arith.constant 0 : index
    %c0_106 = arith.constant 0 : index
    %c0_107 = arith.constant 0 : index
    %234 = vector.load %arg7[%c0_105, %c0_106, %c0_107] : memref<3x32x32xbf16, #tpu.memory_space<vmem>>, vector<1x32x32xbf16>
    %235 = vector.shape_cast %234 : vector<1x32x32xbf16> to vector<32x32xbf16>
    %cst_108 = arith.constant dense<0.000000e+00> : vector<2x32xf32>
    %236 = tpu.matmul %233, %235, %cst_108 {dimension_numbers = #tpu.dot_dimension_numbers<[1], [0], [0], [1], [0, 0, 1, 1], [], []>} : vector<2x32xbf16>, vector<32x32xbf16>, vector<2x32xf32> -> vector<2x32xf32>
    %c1_109 = arith.constant 1 : index
    %c0_110 = arith.constant 0 : index
    %c0_111 = arith.constant 0 : index
    %237 = vector.load %arg7[%c1_109, %c0_110, %c0_111] : memref<3x32x32xbf16, #tpu.memory_space<vmem>>, vector<1x32x32xbf16>
    %238 = vector.shape_cast %237 : vector<1x32x32xbf16> to vector<32x32xbf16>
    %cst_112 = arith.constant dense<0.000000e+00> : vector<2x32xf32>
    %239 = tpu.matmul %233, %238, %cst_112 {dimension_numbers = #tpu.dot_dimension_numbers<[1], [0], [0], [1], [0, 0, 1, 1], [], []>} : vector<2x32xbf16>, vector<32x32xbf16>, vector<2x32xf32> -> vector<2x32xf32>
    %c2_113 = arith.constant 2 : index
    %c0_114 = arith.constant 0 : index
    %c0_115 = arith.constant 0 : index
    %240 = vector.load %arg7[%c2_113, %c0_114, %c0_115] : memref<3x32x32xbf16, #tpu.memory_space<vmem>>, vector<1x32x32xbf16>
    %241 = vector.shape_cast %240 : vector<1x32x32xbf16> to vector<32x32xbf16>
    %cst_116 = arith.constant dense<0.000000e+00> : vector<2x32xf32>
    %242 = tpu.matmul %233, %241, %cst_116 {dimension_numbers = #tpu.dot_dimension_numbers<[1], [0], [0], [1], [0, 0, 1, 1], [], []>} : vector<2x32xbf16>, vector<32x32xbf16>, vector<2x32xf32> -> vector<2x32xf32>
    %243 = vector.extract_strided_slice %232 {offsets = [0, 0, 0], sizes = [1, 2, 32], strides = [1, 1, 1]} : vector<3x2x32xf32> to vector<1x2x32xf32>
    %244 = vector.shape_cast %243 : vector<1x2x32xf32> to vector<2x32xf32>
    %245 = arith.addf %244, %236 : vector<2x32xf32>
    %246 = arith.negf %245 : vector<2x32xf32>
    %247 = math.exp %246 : vector<2x32xf32>
    %cst_117 = arith.constant 1.000000e+00 : f32
    %248 = vector.broadcast %cst_117 : f32 to vector<2x32xf32>
    %249 = arith.addf %248, %247 : vector<2x32xf32>
    %250 = arith.divf %248, %249 : vector<2x32xf32>
    %251 = vector.extract_strided_slice %232 {offsets = [1, 0, 0], sizes = [1, 2, 32], strides = [1, 1, 1]} : vector<3x2x32xf32> to vector<1x2x32xf32>
    %252 = vector.shape_cast %251 : vector<1x2x32xf32> to vector<2x32xf32>
    %253 = arith.addf %252, %239 : vector<2x32xf32>
    %254 = arith.negf %253 : vector<2x32xf32>
    %255 = math.exp %254 : vector<2x32xf32>
    %cst_118 = arith.constant 1.000000e+00 : f32
    %256 = vector.broadcast %cst_118 : f32 to vector<2x32xf32>
    %257 = arith.addf %256, %255 : vector<2x32xf32>
    %258 = arith.divf %256, %257 : vector<2x32xf32>
    %259 = vector.extract_strided_slice %232 {offsets = [2, 0, 0], sizes = [1, 2, 32], strides = [1, 1, 1]} : vector<3x2x32xf32> to vector<1x2x32xf32>
    %260 = vector.shape_cast %259 : vector<1x2x32xf32> to vector<2x32xf32>
    %261 = vector.broadcast %3 : vector<1x32xf32> to vector<2x32xf32>
    %262 = arith.addf %242, %261 : vector<2x32xf32>
    %263 = arith.mulf %250, %262 : vector<2x32xf32>
    %264 = arith.addf %260, %263 : vector<2x32xf32>
    %265 = math.tanh %264 : vector<2x32xf32>
    %cst_119 = arith.constant 1.000000e+00 : f32
    %266 = vector.broadcast %cst_119 : f32 to vector<2x32xf32>
    %267 = arith.subf %266, %258 : vector<2x32xf32>
    %268 = arith.mulf %267, %265 : vector<2x32xf32>
    %269 = arith.mulf %258, %225 : vector<2x32xf32>
    %270 = arith.addf %268, %269 : vector<2x32xf32>
    %271 = arith.index_cast %c5_i32 : i32 to index
    %c0_120 = arith.constant 0 : index
    %c0_121 = arith.constant 0 : index
    %272 = vector.load %arg5[%271, %c0_120, %c0_121] : memref<8x2x32xf32, #tpu.memory_space<vmem>>, vector<1x2x32xf32>
    %273 = vector.shape_cast %272 : vector<1x2x32xf32> to vector<2x32xf32>
    %274 = vector.shape_cast %270 : vector<2x32xf32> to vector<1x2x32xf32>
    tpu.vector_store %arg5[%271, %c0_120, %c0_121], %274 {strides = array<i32>} : memref<8x2x32xf32, #tpu.memory_space<vmem>>, vector<1x2x32xf32>,
    %c6_i32 = arith.constant 6 : i32
    %275 = arith.index_cast %c6_i32 : i32 to index
    %c0_122 = arith.constant 0 : index
    %c0_123 = arith.constant 0 : index
    %c0_124 = arith.constant 0 : index
    %276 = vector.load %arg2[%275, %c0_122, %c0_123, %c0_124] : memref<8x3x2x32xf32, #tpu.memory_space<vmem>>, vector<1x3x2x32xf32>
    %277 = vector.shape_cast %276 : vector<1x3x2x32xf32> to vector<3x2x32xf32>
    %278 = arith.truncf %270 : vector<2x32xf32> to vector<2x32xbf16>
    %c0_125 = arith.constant 0 : index
    %c0_126 = arith.constant 0 : index
    %c0_127 = arith.constant 0 : index
    %279 = vector.load %arg7[%c0_125, %c0_126, %c0_127] : memref<3x32x32xbf16, #tpu.memory_space<vmem>>, vector<1x32x32xbf16>
    %280 = vector.shape_cast %279 : vector<1x32x32xbf16> to vector<32x32xbf16>
    %cst_128 = arith.constant dense<0.000000e+00> : vector<2x32xf32>
    %281 = tpu.matmul %278, %280, %cst_128 {dimension_numbers = #tpu.dot_dimension_numbers<[1], [0], [0], [1], [0, 0, 1, 1], [], []>} : vector<2x32xbf16>, vector<32x32xbf16>, vector<2x32xf32> -> vector<2x32xf32>
    %c1_129 = arith.constant 1 : index
    %c0_130 = arith.constant 0 : index
    %c0_131 = arith.constant 0 : index
    %282 = vector.load %arg7[%c1_129, %c0_130, %c0_131] : memref<3x32x32xbf16, #tpu.memory_space<vmem>>, vector<1x32x32xbf16>
    %283 = vector.shape_cast %282 : vector<1x32x32xbf16> to vector<32x32xbf16>
    %cst_132 = arith.constant dense<0.000000e+00> : vector<2x32xf32>
    %284 = tpu.matmul %278, %283, %cst_132 {dimension_numbers = #tpu.dot_dimension_numbers<[1], [0], [0], [1], [0, 0, 1, 1], [], []>} : vector<2x32xbf16>, vector<32x32xbf16>, vector<2x32xf32> -> vector<2x32xf32>
    %c2_133 = arith.constant 2 : index
    %c0_134 = arith.constant 0 : index
    %c0_135 = arith.constant 0 : index
    %285 = vector.load %arg7[%c2_133, %c0_134, %c0_135] : memref<3x32x32xbf16, #tpu.memory_space<vmem>>, vector<1x32x32xbf16>
    %286 = vector.shape_cast %285 : vector<1x32x32xbf16> to vector<32x32xbf16>
    %cst_136 = arith.constant dense<0.000000e+00> : vector<2x32xf32>
    %287 = tpu.matmul %278, %286, %cst_136 {dimension_numbers = #tpu.dot_dimension_numbers<[1], [0], [0], [1], [0, 0, 1, 1], [], []>} : vector<2x32xbf16>, vector<32x32xbf16>, vector<2x32xf32> -> vector<2x32xf32>
    %288 = vector.extract_strided_slice %277 {offsets = [0, 0, 0], sizes = [1, 2, 32], strides = [1, 1, 1]} : vector<3x2x32xf32> to vector<1x2x32xf32>
    %289 = vector.shape_cast %288 : vector<1x2x32xf32> to vector<2x32xf32>
    %290 = arith.addf %289, %281 : vector<2x32xf32>
    %291 = arith.negf %290 : vector<2x32xf32>
    %292 = math.exp %291 : vector<2x32xf32>
    %cst_137 = arith.constant 1.000000e+00 : f32
    %293 = vector.broadcast %cst_137 : f32 to vector<2x32xf32>
    %294 = arith.addf %293, %292 : vector<2x32xf32>
    %295 = arith.divf %293, %294 : vector<2x32xf32>
    %296 = vector.extract_strided_slice %277 {offsets = [1, 0, 0], sizes = [1, 2, 32], strides = [1, 1, 1]} : vector<3x2x32xf32> to vector<1x2x32xf32>
    %297 = vector.shape_cast %296 : vector<1x2x32xf32> to vector<2x32xf32>
    %298 = arith.addf %297, %284 : vector<2x32xf32>
    %299 = arith.negf %298 : vector<2x32xf32>
    %300 = math.exp %299 : vector<2x32xf32>
    %cst_138 = arith.constant 1.000000e+00 : f32
    %301 = vector.broadcast %cst_138 : f32 to vector<2x32xf32>
    %302 = arith.addf %301, %300 : vector<2x32xf32>
    %303 = arith.divf %301, %302 : vector<2x32xf32>
    %304 = vector.extract_strided_slice %277 {offsets = [2, 0, 0], sizes = [1, 2, 32], strides = [1, 1, 1]} : vector<3x2x32xf32> to vector<1x2x32xf32>
    %305 = vector.shape_cast %304 : vector<1x2x32xf32> to vector<2x32xf32>
    %306 = vector.broadcast %3 : vector<1x32xf32> to vector<2x32xf32>
    %307 = arith.addf %287, %306 : vector<2x32xf32>
    %308 = arith.mulf %295, %307 : vector<2x32xf32>
    %309 = arith.addf %305, %308 : vector<2x32xf32>
    %310 = math.tanh %309 : vector<2x32xf32>
    %cst_139 = arith.constant 1.000000e+00 : f32
    %311 = vector.broadcast %cst_139 : f32 to vector<2x32xf32>
    %312 = arith.subf %311, %303 : vector<2x32xf32>
    %313 = arith.mulf %312, %310 : vector<2x32xf32>
    %314 = arith.mulf %303, %270 : vector<2x32xf32>
    %315 = arith.addf %313, %314 : vector<2x32xf32>
    %316 = arith.index_cast %c6_i32 : i32 to index
    %c0_140 = arith.constant 0 : index
    %c0_141 = arith.constant 0 : index
    %317 = vector.load %arg5[%316, %c0_140, %c0_141] : memref<8x2x32xf32, #tpu.memory_space<vmem>>, vector<1x2x32xf32>
    %318 = vector.shape_cast %317 : vector<1x2x32xf32> to vector<2x32xf32>
    %319 = vector.shape_cast %315 : vector<2x32xf32> to vector<1x2x32xf32>
    tpu.vector_store %arg5[%316, %c0_140, %c0_141], %319 {strides = array<i32>} : memref<8x2x32xf32, #tpu.memory_space<vmem>>, vector<1x2x32xf32>,
    %c7_i32 = arith.constant 7 : i32
    %320 = arith.index_cast %c7_i32 : i32 to index
    %c0_142 = arith.constant 0 : index
    %c0_143 = arith.constant 0 : index
    %c0_144 = arith.constant 0 : index
    %321 = vector.load %arg2[%320, %c0_142, %c0_143, %c0_144] : memref<8x3x2x32xf32, #tpu.memory_space<vmem>>, vector<1x3x2x32xf32>
    %322 = vector.shape_cast %321 : vector<1x3x2x32xf32> to vector<3x2x32xf32>
    %323 = arith.truncf %315 : vector<2x32xf32> to vector<2x32xbf16>
    %c0_145 = arith.constant 0 : index
    %c0_146 = arith.constant 0 : index
    %c0_147 = arith.constant 0 : index
    %324 = vector.load %arg7[%c0_145, %c0_146, %c0_147] : memref<3x32x32xbf16, #tpu.memory_space<vmem>>, vector<1x32x32xbf16>
    %325 = vector.shape_cast %324 : vector<1x32x32xbf16> to vector<32x32xbf16>
    %cst_148 = arith.constant dense<0.000000e+00> : vector<2x32xf32>
    %326 = tpu.matmul %323, %325, %cst_148 {dimension_numbers = #tpu.dot_dimension_numbers<[1], [0], [0], [1], [0, 0, 1, 1], [], []>} : vector<2x32xbf16>, vector<32x32xbf16>, vector<2x32xf32> -> vector<2x32xf32>
    %c1_149 = arith.constant 1 : index
    %c0_150 = arith.constant 0 : index
    %c0_151 = arith.constant 0 : index
    %327 = vector.load %arg7[%c1_149, %c0_150, %c0_151] : memref<3x32x32xbf16, #tpu.memory_space<vmem>>, vector<1x32x32xbf16>
    %328 = vector.shape_cast %327 : vector<1x32x32xbf16> to vector<32x32xbf16>
    %cst_152 = arith.constant dense<0.000000e+00> : vector<2x32xf32>
    %329 = tpu.matmul %323, %328, %cst_152 {dimension_numbers = #tpu.dot_dimension_numbers<[1], [0], [0], [1], [0, 0, 1, 1], [], []>} : vector<2x32xbf16>, vector<32x32xbf16>, vector<2x32xf32> -> vector<2x32xf32>
    %c2_153 = arith.constant 2 : index
    %c0_154 = arith.constant 0 : index
    %c0_155 = arith.constant 0 : index
    %330 = vector.load %arg7[%c2_153, %c0_154, %c0_155] : memref<3x32x32xbf16, #tpu.memory_space<vmem>>, vector<1x32x32xbf16>
    %331 = vector.shape_cast %330 : vector<1x32x32xbf16> to vector<32x32xbf16>
    %cst_156 = arith.constant dense<0.000000e+00> : vector<2x32xf32>
    %332 = tpu.matmul %323, %331, %cst_156 {dimension_numbers = #tpu.dot_dimension_numbers<[1], [0], [0], [1], [0, 0, 1, 1], [], []>} : vector<2x32xbf16>, vector<32x32xbf16>, vector<2x32xf32> -> vector<2x32xf32>
    %333 = vector.extract_strided_slice %322 {offsets = [0, 0, 0], sizes = [1, 2, 32], strides = [1, 1, 1]} : vector<3x2x32xf32> to vector<1x2x32xf32>
    %334 = vector.shape_cast %333 : vector<1x2x32xf32> to vector<2x32xf32>
    %335 = arith.addf %334, %326 : vector<2x32xf32>
    %336 = arith.negf %335 : vector<2x32xf32>
    %337 = math.exp %336 : vector<2x32xf32>
    %cst_157 = arith.constant 1.000000e+00 : f32
    %338 = vector.broadcast %cst_157 : f32 to vector<2x32xf32>
    %339 = arith.addf %338, %337 : vector<2x32xf32>
    %340 = arith.divf %338, %339 : vector<2x32xf32>
    %341 = vector.extract_strided_slice %322 {offsets = [1, 0, 0], sizes = [1, 2, 32], strides = [1, 1, 1]} : vector<3x2x32xf32> to vector<1x2x32xf32>
    %342 = vector.shape_cast %341 : vector<1x2x32xf32> to vector<2x32xf32>
    %343 = arith.addf %342, %329 : vector<2x32xf32>
    %344 = arith.negf %343 : vector<2x32xf32>
    %345 = math.exp %344 : vector<2x32xf32>
    %cst_158 = arith.constant 1.000000e+00 : f32
    %346 = vector.broadcast %cst_158 : f32 to vector<2x32xf32>
    %347 = arith.addf %346, %345 : vector<2x32xf32>
    %348 = arith.divf %346, %347 : vector<2x32xf32>
    %349 = vector.extract_strided_slice %322 {offsets = [2, 0, 0], sizes = [1, 2, 32], strides = [1, 1, 1]} : vector<3x2x32xf32> to vector<1x2x32xf32>
    %350 = vector.shape_cast %349 : vector<1x2x32xf32> to vector<2x32xf32>
    %351 = vector.broadcast %3 : vector<1x32xf32> to vector<2x32xf32>
    %352 = arith.addf %332, %351 : vector<2x32xf32>
    %353 = arith.mulf %340, %352 : vector<2x32xf32>
    %354 = arith.addf %350, %353 : vector<2x32xf32>
    %355 = math.tanh %354 : vector<2x32xf32>
    %cst_159 = arith.constant 1.000000e+00 : f32
    %356 = vector.broadcast %cst_159 : f32 to vector<2x32xf32>
    %357 = arith.subf %356, %348 : vector<2x32xf32>
    %358 = arith.mulf %357, %355 : vector<2x32xf32>
    %359 = arith.mulf %348, %315 : vector<2x32xf32>
    %360 = arith.addf %358, %359 : vector<2x32xf32>
    %361 = arith.index_cast %c7_i32 : i32 to index
    %c0_160 = arith.constant 0 : index
    %c0_161 = arith.constant 0 : index
    %362 = vector.load %arg5[%361, %c0_160, %c0_161] : memref<8x2x32xf32, #tpu.memory_space<vmem>>, vector<1x2x32xf32>
    %363 = vector.shape_cast %362 : vector<1x2x32xf32> to vector<2x32xf32>
    %364 = vector.shape_cast %360 : vector<2x32xf32> to vector<1x2x32xf32>
    tpu.vector_store %arg5[%361, %c0_160, %c0_161], %364 {strides = array<i32>} : memref<8x2x32xf32, #tpu.memory_space<vmem>>, vector<1x2x32xf32>,
    %c8_i32 = arith.constant 8 : i32
    %c0_162 = arith.constant 0 : index
    %c0_163 = arith.constant 0 : index
    %365 = vector.load %arg6[%c0_162, %c0_163] : memref<2x32xf32, #tpu.memory_space<vmem>>, vector<2x32xf32>
    tpu.vector_store %arg6[%c0_162, %c0_163], %360 {strides = array<i32>} : memref<2x32xf32, #tpu.memory_space<vmem>>, vector<2x32xf32>,
    return
  }
  func.func @transform_0(%arg0: i32, %arg1: i32) -> (i32, i32, i32, i32) {
    %c0_i32 = arith.constant 0 : i32
    %c0_i32_0 = arith.constant 0 : i32
    %c0_i32_1 = arith.constant 0 : i32
    return %arg1, %c0_i32, %arg0, %c0_i32_0 : i32, i32, i32, i32
  }
  func.func @transform_1(%arg0: i32, %arg1: i32) -> (i32, i32) {
    %c0_i32 = arith.constant 0 : i32
    %c0_i32_0 = arith.constant 0 : i32
    %c0_i32_1 = arith.constant 0 : i32
    return %c0_i32, %c0_i32_0 : i32, i32
  }
  func.func @transform_3(%arg0: i32, %arg1: i32) -> (i32, i32, i32) {
    %c0_i32 = arith.constant 0 : i32
    %c0_i32_0 = arith.constant 0 : i32
    return %arg1, %arg0, %c0_i32 : i32, i32, i32
  }
}

</mosaic_0001>

<bundles_post_ra>
// kernel: vanilla_gru_forward.1
= control target key start
LH: loop header
LB: loop body
LE: loop exit
PB: predicated region body
PF: predicated region fallthrough
CT: control target
= control target key end

     0   :  { %s2119_s0 = inlined_call_operand.vmem [shape: f32[8,3,2,32], index: 0, kind: input, shape index: {}]   ;;  %s2120_s1 = inlined_call_operand.vmem [shape: f32[1,32], index: 1, kind: input, shape index: {}]   ;;  %s2121_s2 = inlined_call_operand.vmem [shape: bf16[3,32,32], index: 2, kind: input, shape index: {}]   ;;  %s2122_s3 = inlined_call_operand.vmem [shape: f32[8,2,32], index: 3, kind: output, shape index: {}]  }
   0x1   :  { %v1804_v0 = vld [vmem:[%s2121_s2] sm:$0xff]  ;;  %v1809_v1 = vld [vmem:[%s2121_s2 + $0x8] sm:$0xff]  ;;  %v1814_v2 = vld [vmem:[%s2121_s2 + $0x10] sm:$0xff] }
   0x2   :  { %v1819_v3 = vld [vmem:[%s2121_s2 + $0x18] sm:$0xff]  ;;  %v1824_v4 = vld [vmem:[%s2121_s2 + $0x20] sm:$0xff]  ;;  %v1829_v5 = vld [vmem:[%s2121_s2 + $0x28] sm:$0xff] }
   0x3   :  { %68 = vsyncadd [#allocation4], 768 }
   0x4   :  { %1777 = dma.done.wait [#allocation4], 768 }
   0x5   :  { %1778 = vsyncadd [#allocation4], 4294966528  ;;  %vm74_vm0 = vcmask 254976   ;;  %v1779_v6 = vmov 0.0   ;;  %vm1780_vm1 = vmmov 0   ;;  %vm84_vm2 = vcmask 261120  }
   0x6   :  { %1503 = vmatprep.subr.bf16.mxu0 %v1779_v6  ;;  %1507 = vmatprep.mubr.msk.bf16.mxu0 %vm1780_vm1, %v1779_v6  ;;  %75 = vst.msk [vmem:[#allocation2] sm:$0x3] %vm74_vm0, %v1779_v6  ;;  %v78_v9 = vld [vmem:[%s2119_s0] sm:$0x3]  ;;  %v79_v10 = vld [vmem:[%s2119_s0 + $0x2] sm:$0x3] }
   0x7   :  { %1504 = vmatpush3.bf16.msra.mxu0 %v1804_v0  ;;  %1511 = vmatprep.subr.bf16.mxu1 %v1779_v6  ;;  %v1877_v30 = vld [vmem:[%s2120_s1] ss:$0 sm:$0xff]  ;;  %v80_v34 = vld [vmem:[%s2119_s0 + $0x4] sm:$0x3]  ;;  %v1367_v44 = vld [vmem:[%s2119_s0 + $0x6] sm:$0x3] }
   0x8   :  { %1505 = vmatprep.subr.bf16.mxu0 %v1779_v6  ;;  %1512 = vmatpush3.bf16.msra.mxu1 %v1814_v2  ;;  %v1368_v48 = vld [vmem:[%s2119_s0 + $0x8] sm:$0x3] }
   0x9   :  { %1513 = vmatprep.subr.bf16.mxu1 %v1779_v6  ;;  %1515 = vmatprep.mubr.msk.bf16.mxu1 %vm1780_vm1, %v1779_v6 }
   0xb   :  { %1506 = vmatpush3.bf16.msra.mxu0 %v1809_v1 }
   0xc   :  { %1514 = vmatpush3.bf16.msra.mxu1 %v1819_v3  ;;  %1519 = vmatprep.subr.bf16.mxu0 %v1779_v6 }
   0xd   :  { %v77_v7 = vld [vmem:[#allocation2] sm:$0x3]  ;;  %1527 = vmatprep.subr.bf16.mxu1 %v1779_v6 }
   0xe   :  { %v81_v8 = vpack.c.bf16 %v77_v7, %v77_v7 }
  0x10   :  { %1508 = vmatmul.mubr.msk.bf16.vlgmr.msra.gmra.mrb[0].mxu0 %vm84_vm2, %v81_v8  ;;  %1516 = vmatmul.mubr.msk.bf16.vlgmr.msra.gmra.mrb[0].mxu1 %vm84_vm2, %v81_v8 }
  0x11   :  { %1520 = vmatpush3.bf16.msra.mxu0 %v1824_v4  ;;  %1523 = vmatprep.mubr.msk.bf16.mxu0 %vm1780_vm1, %v1779_v6 }
  0x12   :  { %1521 = vmatprep.subr.bf16.mxu0 %v1779_v6  ;;  %1528 = vmatpush3.bf16.msra.mxu1 %v1804_v0 }
  0x13   :  { %1529 = vmatprep.subr.bf16.mxu1 %v1779_v6  ;;  %1531 = vmatprep.mubr.msk.bf16.mxu1 %vm1780_vm1, %v1779_v6 }
  0x15   :  { %1522 = vmatpush3.bf16.msra.mxu0 %v1829_v5 }
  0x16   :  { %1535 = vmatprep.subr.bf16.mxu0 %v1779_v6  ;;  %1530 = vmatpush3.bf16.msra.mxu1 %v1809_v1 }
  0x17   :  { %1543 = vmatprep.subr.bf16.mxu1 %v1779_v6 }
  0x18   :  { %1524 = vmatmul.mubr.msk.bf16.vlgmr.msra.gmra.mrb[4].mxu0 %vm84_vm2, %v81_v8 }
  0x19   :  { %1536 = vmatpush3.bf16.msra.mxu0 %v1814_v2  ;;  %1539 = vmatprep.mubr.msk.bf16.mxu0 %vm1780_vm1, %v1779_v6 }
  0x1a   :  { %1537 = vmatprep.subr.bf16.mxu0 %v1779_v6 }
  0x1d   :  { %1538 = vmatpush3.bf16.msra.mxu0 %v1819_v3 }
  0x1e   :  { %1551 = vmatprep.subr.bf16.mxu0 %v1779_v6 }
  0xe3   :  { %v122_v11 = vpop.f32.mrb[0].mxu0  ;;  %v165_v12 = vpop.f32.mrb[0].mxu1 }
  0xe4   :  { %v174_v13 = vadd.f32 %v122_v11, %v78_v9  ;;  %v1509_v14 = vpop.f32.mrb[1].mxu0  ;;  %v1517_v15 = vpop.f32.mrb[1].mxu1  ;;  %v181_v17 = vadd.f32 %v165_v12, %v79_v10  ;;  %v1369_v11 = vld [vmem:[%s2119_s0 + $0xa] sm:$0x3] }
  0xe5   :  { %v125_v16 = vpop.f32.mrb[2].mxu0  ;;  %v168_v18 = vpop.f32.mrb[2].mxu1 }
  0xe6   :  { %v1363_v19 = vmul.f32 -1.442695, %v174_v13  ;;  %v1510_v20 = vpop.f32.mrb[3].mxu0  ;;  %v1518_v21 = vpop.f32.mrb[3].mxu1  ;;  %v1364_v22 = vmul.f32 -1.442695, %v181_v17 }
  0xe7   :  { %v1376_v21 = vld [vmem:[%s2119_s0 + $0xc] sm:$0x3] }
  0xe8   :  { %1697 = vpow2.f32 %v1363_v19 }
  0xe9   :  { %1699 = vpow2.f32 %v1364_v22 }
  0xeb   :  { %v228_v23 = vpop.f32.mrb[4].mxu0 }
  0xec   :  { %v1525_v24 = vpop.f32.mrb[5].mxu0  ;;  %v229_v32 = vadd.f32 %v1877_v30, %v228_v23 }
  0xed   :  { %v231_v25 = vpop.f32.mrb[6].mxu0 }
  0xee   :  { %v1526_v26 = vpop.f32.mrb[7].mxu0  ;;  %v1377_v25 = vld [vmem:[%s2119_s0 + $0xe] sm:$0x3] }
  0xf2   :  { %v1698_v27 = vpop.eup %1697 }
  0xf3   :  { %v178_v28 = vadd.f32 1.0, %v1698_v27  ;;  %v1700_v29 = vpop.eup %1699 }
  0xf4   :  { %v185_v31 = vadd.f32 1.0, %v1700_v29 }
  0xf5   :  { %1701 = vrcp.f32 %v178_v28 }
  0xf6   :  { %1703 = vrcp.f32 %v185_v31 }
  0xff   :  { %v1702_v33 = vpop.eup %1701 }
 0x100   :  { %v234_v35 = vmul.f32 %v1702_v33, %v229_v32  ;;  %v1704_v37 = vpop.eup %1703 }
 0x101   :  { %v237_v38 = vsub.f32 1.0, %v1704_v37  ;;  %v239_v40 = vmul.f32 %v1704_v37, %v77_v7 }
 0x102   :  { %v235_v36 = vadd.f32 %v234_v35, %v80_v34 }
 0x104   :  { %1705 = vtanh.f32 %v235_v36 }
 0x10e   :  { %v1706_v39 = vpop.eup %1705 }
 0x10f   :  { %v238_v41 = vmul.f32 %v1706_v39, %v237_v38 }
 0x111   :  { %v240_v42 = vadd.f32 %v239_v40, %v238_v41 }
 0x113   :  { %242 = vst.msk [vmem:[%s2122_s3] sm:$0x3] %vm74_vm0, %v240_v42  ;;  %v247_v43 = vpack.c.bf16 %v240_v42, %v240_v42 }
 0x115   :  { %1532 = vmatmul.mubr.msk.bf16.vlgmr.msra.gmra.mrb[4].mxu1 %vm84_vm2, %v247_v43  ;;  %1540 = vmatmul.mubr.msk.bf16.vlgmr.msra.gmra.mrb[8].mxu0 %vm84_vm2, %v247_v43 }
 0x116   :  { %1544 = vmatpush3.bf16.msra.mxu1 %v1824_v4  ;;  %1547 = vmatprep.mubr.msk.bf16.mxu1 %vm1780_vm1, %v1779_v6 }
 0x117   :  { %1545 = vmatprep.subr.bf16.mxu1 %v1779_v6  ;;  %1552 = vmatpush3.bf16.msra.mxu0 %v1804_v0 }
 0x118   :  { %1553 = vmatprep.subr.bf16.mxu0 %v1779_v6  ;;  %1555 = vmatprep.mubr.msk.bf16.mxu0 %vm1780_vm1, %v1779_v6 }
 0x11a   :  { %1546 = vmatpush3.bf16.msra.mxu1 %v1829_v5 }
 0x11b   :  { %1559 = vmatprep.subr.bf16.mxu1 %v1779_v6  ;;  %1554 = vmatpush3.bf16.msra.mxu0 %v1809_v1 }
 0x11c   :  { %1567 = vmatprep.subr.bf16.mxu0 %v1779_v6 }
 0x11d   :  { %1548 = vmatmul.mubr.msk.bf16.vlgmr.msra.gmra.mrb[8].mxu1 %vm84_vm2, %v247_v43 }
 0x11e   :  { %1560 = vmatpush3.bf16.msra.mxu1 %v1814_v2  ;;  %1563 = vmatprep.mubr.msk.bf16.mxu1 %vm1780_vm1, %v1779_v6 }
 0x11f   :  { %1561 = vmatprep.subr.bf16.mxu1 %v1779_v6 }
 0x122   :  { %1562 = vmatpush3.bf16.msra.mxu1 %v1819_v3 }
 0x123   :  { %1575 = vmatprep.subr.bf16.mxu1 %v1779_v6 }
 0x1e8   :  { %v287_v45 = vpop.f32.mrb[4].mxu1  ;;  %v329_v46 = vpop.f32.mrb[8].mxu0 }
 0x1e9   :  { %v337_v47 = vadd.f32 %v1367_v44, %v287_v45  ;;  %v1533_v49 = vpop.f32.mrb[5].mxu1  ;;  %v1541_v50 = vpop.f32.mrb[9].mxu0  ;;  %v344_v56 = vadd.f32 %v1368_v48, %v329_v46  ;;  %v1378_v46 = vld [vmem:[%s2119_s0 + $0x10] sm:$0x3] }
 0x1ea   :  { %v290_v51 = vpop.f32.mrb[6].mxu1  ;;  %v332_v52 = vpop.f32.mrb[10].mxu0 }
 0x1eb   :  { %v1372_v53 = vmul.f32 -1.442695, %v337_v47  ;;  %v1534_v54 = vpop.f32.mrb[7].mxu1  ;;  %v1542_v55 = vpop.f32.mrb[11].mxu0  ;;  %v1373_v57 = vmul.f32 -1.442695, %v344_v56 }
 0x1ec   :  { %v1385_v56 = vld [vmem:[%s2119_s0 + $0x12] sm:$0x3] }
 0x1ed   :  { %1707 = vpow2.f32 %v1372_v53 }
 0x1ee   :  { %1709 = vpow2.f32 %v1373_v57 }
 0x1f0   :  { %v385_v58 = vpop.f32.mrb[8].mxu1 }
 0x1f1   :  { %v1549_v59 = vpop.f32.mrb[9].mxu1  ;;  %v386_v9 = vadd.f32 %v1877_v30, %v385_v58 }
 0x1f2   :  { %v388_v60 = vpop.f32.mrb[10].mxu1 }
 0x1f3   :  { %v1550_v61 = vpop.f32.mrb[11].mxu1  ;;  %v1386_v60 = vld [vmem:[%s2119_s0 + $0x14] sm:$0x3] }
 0x1f7   :  { %v1708_v62 = vpop.eup %1707 }
 0x1f8   :  { %v341_v63 = vadd.f32 1.0, %v1708_v62  ;;  %v1710_v7 = vpop.eup %1709 }
 0x1f9   :  { %v348_v8 = vadd.f32 1.0, %v1710_v7 }
 0x1fa   :  { %1711 = vrcp.f32 %v341_v63 }
 0x1fb   :  { %1713 = vrcp.f32 %v348_v8 }
 0x204   :  { %v1712_v10 = vpop.eup %1711 }
 0x205   :  { %v391_v12 = vmul.f32 %v1712_v10, %v386_v9  ;;  %v1714_v14 = vpop.eup %1713 }
 0x206   :  { %v394_v15 = vsub.f32 1.0, %v1714_v14  ;;  %v396_v17 = vmul.f32 %v1714_v14, %v240_v42 }
 0x207   :  { %v392_v13 = vadd.f32 %v1369_v11, %v391_v12 }
 0x209   :  { %1715 = vtanh.f32 %v392_v13 }
 0x213   :  { %v1716_v16 = vpop.eup %1715 }
 0x214   :  { %v395_v18 = vmul.f32 %v1716_v16, %v394_v15 }
 0x216   :  { %v397_v19 = vadd.f32 %v396_v17, %v395_v18 }
 0x218   :  { %1375 = vst.msk [vmem:[%s2122_s3 + $0x2] sm:$0x3] %vm74_vm0, %v397_v19  ;;  %v404_v20 = vpack.c.bf16 %v397_v19, %v397_v19 }
 0x21a   :  { %1556 = vmatmul.mubr.msk.bf16.vlgmr.msra.gmra.mrb[12].mxu0 %vm84_vm2, %v404_v20  ;;  %1564 = vmatmul.mubr.msk.bf16.vlgmr.msra.gmra.mrb[12].mxu1 %vm84_vm2, %v404_v20 }
 0x21b   :  { %1568 = vmatpush3.bf16.msra.mxu0 %v1824_v4  ;;  %1571 = vmatprep.mubr.msk.bf16.mxu0 %vm1780_vm1, %v1779_v6 }
 0x21c   :  { %1569 = vmatprep.subr.bf16.mxu0 %v1779_v6  ;;  %1576 = vmatpush3.bf16.msra.mxu1 %v1804_v0 }
 0x21d   :  { %1577 = vmatprep.subr.bf16.mxu1 %v1779_v6  ;;  %1579 = vmatprep.mubr.msk.bf16.mxu1 %vm1780_vm1, %v1779_v6 }
 0x21f   :  { %1570 = vmatpush3.bf16.msra.mxu0 %v1829_v5 }
 0x220   :  { %1583 = vmatprep.subr.bf16.mxu0 %v1779_v6  ;;  %1578 = vmatpush3.bf16.msra.mxu1 %v1809_v1 }
 0x221   :  { %1591 = vmatprep.subr.bf16.mxu1 %v1779_v6 }
 0x222   :  { %1572 = vmatmul.mubr.msk.bf16.vlgmr.msra.gmra.mrb[16].mxu0 %vm84_vm2, %v404_v20 }
 0x223   :  { %1584 = vmatpush3.bf16.msra.mxu0 %v1814_v2  ;;  %1587 = vmatprep.mubr.msk.bf16.mxu0 %vm1780_vm1, %v1779_v6 }
 0x224   :  { %1585 = vmatprep.subr.bf16.mxu0 %v1779_v6 }
 0x227   :  { %1586 = vmatpush3.bf16.msra.mxu0 %v1819_v3 }
 0x228   :  { %1599 = vmatprep.subr.bf16.mxu0 %v1779_v6 }
 0x2ed   :  { %v444_v22 = vpop.f32.mrb[12].mxu0  ;;  %v486_v23 = vpop.f32.mrb[12].mxu1 }
 0x2ee   :  { %v494_v24 = vadd.f32 %v1376_v21, %v444_v22  ;;  %v1557_v26 = vpop.f32.mrb[13].mxu0  ;;  %v1565_v27 = vpop.f32.mrb[13].mxu1  ;;  %v501_v34 = vadd.f32 %v1377_v25, %v486_v23  ;;  %v1387_v23 = vld [vmem:[%s2119_s0 + $0x16] sm:$0x3] }
 0x2ef   :  { %v447_v28 = vpop.f32.mrb[14].mxu0  ;;  %v489_v29 = vpop.f32.mrb[14].mxu1 }
 0x2f0   :  { %v1381_v31 = vmul.f32 -1.442695, %v494_v24  ;;  %v1558_v32 = vpop.f32.mrb[15].mxu0  ;;  %v1566_v33 = vpop.f32.mrb[15].mxu1  ;;  %v1382_v35 = vmul.f32 -1.442695, %v501_v34 }
 0x2f1   :  { %v1394_v34 = vld [vmem:[%s2119_s0 + $0x18] sm:$0x3] }
 0x2f2   :  { %1717 = vpow2.f32 %v1381_v31 }
 0x2f3   :  { %1719 = vpow2.f32 %v1382_v35 }
 0x2f5   :  { %v542_v36 = vpop.f32.mrb[16].mxu0 }
 0x2f6   :  { %v1573_v37 = vpop.f32.mrb[17].mxu0  ;;  %v543_v44 = vadd.f32 %v1877_v30, %v542_v36 }
 0x2f7   :  { %v545_v38 = vpop.f32.mrb[18].mxu0 }
 0x2f8   :  { %v1574_v39 = vpop.f32.mrb[19].mxu0  ;;  %v1395_v38 = vld [vmem:[%s2119_s0 + $0x1a] sm:$0x3] }
 0x2fc   :  { %v1718_v40 = vpop.eup %1717 }
 0x2fd   :  { %v498_v41 = vadd.f32 1.0, %v1718_v40  ;;  %v1720_v42 = vpop.eup %1719 }
 0x2fe   :  { %v505_v43 = vadd.f32 1.0, %v1720_v42 }
 0x2ff   :  { %1721 = vrcp.f32 %v498_v41 }
 0x300   :  { %1723 = vrcp.f32 %v505_v43 }
 0x309   :  { %v1722_v45 = vpop.eup %1721 }
 0x30a   :  { %v548_v47 = vmul.f32 %v1722_v45, %v543_v44  ;;  %v1724_v49 = vpop.eup %1723 }
 0x30b   :  { %v551_v50 = vsub.f32 1.0, %v1724_v49  ;;  %v553_v52 = vmul.f32 %v1724_v49, %v397_v19 }
 0x30c   :  { %v549_v48 = vadd.f32 %v1378_v46, %v548_v47 }
 0x30e   :  { %1725 = vtanh.f32 %v549_v48 }
 0x318   :  { %v1726_v51 = vpop.eup %1725 }
 0x319   :  { %v552_v53 = vmul.f32 %v1726_v51, %v551_v50 }
 0x31b   :  { %v554_v54 = vadd.f32 %v553_v52, %v552_v53 }
 0x31d   :  { %1384 = vst.msk [vmem:[%s2122_s3 + $0x4] sm:$0x3] %vm74_vm0, %v554_v54  ;;  %v561_v55 = vpack.c.bf16 %v554_v54, %v554_v54 }
 0x31f   :  { %1580 = vmatmul.mubr.msk.bf16.vlgmr.msra.gmra.mrb[16].mxu1 %vm84_vm2, %v561_v55  ;;  %1588 = vmatmul.mubr.msk.bf16.vlgmr.msra.gmra.mrb[20].mxu0 %vm84_vm2, %v561_v55 }
 0x320   :  { %1592 = vmatpush3.bf16.msra.mxu1 %v1824_v4  ;;  %1595 = vmatprep.mubr.msk.bf16.mxu1 %vm1780_vm1, %v1779_v6 }
 0x321   :  { %1593 = vmatprep.subr.bf16.mxu1 %v1779_v6  ;;  %1600 = vmatpush3.bf16.msra.mxu0 %v1804_v0 }
 0x322   :  { %1601 = vmatprep.subr.bf16.mxu0 %v1779_v6  ;;  %1603 = vmatprep.mubr.msk.bf16.mxu0 %vm1780_vm1, %v1779_v6 }
 0x324   :  { %1594 = vmatpush3.bf16.msra.mxu1 %v1829_v5 }
 0x325   :  { %1607 = vmatprep.subr.bf16.mxu1 %v1779_v6  ;;  %1602 = vmatpush3.bf16.msra.mxu0 %v1809_v1 }
 0x326   :  { %1615 = vmatprep.subr.bf16.mxu0 %v1779_v6 }
 0x327   :  { %1596 = vmatmul.mubr.msk.bf16.vlgmr.msra.gmra.mrb[20].mxu1 %vm84_vm2, %v561_v55 }
 0x328   :  { %1608 = vmatpush3.bf16.msra.mxu1 %v1814_v2  ;;  %1611 = vmatprep.mubr.msk.bf16.mxu1 %vm1780_vm1, %v1779_v6 }
 0x329   :  { %1609 = vmatprep.subr.bf16.mxu1 %v1779_v6 }
 0x32c   :  { %1610 = vmatpush3.bf16.msra.mxu1 %v1819_v3 }
 0x32d   :  { %1623 = vmatprep.subr.bf16.mxu1 %v1779_v6 }
 0x3f2   :  { %v601_v57 = vpop.f32.mrb[16].mxu1  ;;  %v643_v58 = vpop.f32.mrb[20].mxu0 }
 0x3f3   :  { %v651_v59 = vadd.f32 %v1385_v56, %v601_v57  ;;  %v1581_v61 = vpop.f32.mrb[17].mxu1  ;;  %v1589_v62 = vpop.f32.mrb[21].mxu0  ;;  %v658_v11 = vadd.f32 %v1386_v60, %v643_v58  ;;  %v1396_v58 = vld [vmem:[%s2119_s0 + $0x1c] sm:$0x3] }
 0x3f4   :  { %v604_v63 = vpop.f32.mrb[18].mxu1  ;;  %v646_v7 = vpop.f32.mrb[22].mxu0 }
 0x3f5   :  { %v1390_v8 = vmul.f32 -1.442695, %v651_v59  ;;  %v1582_v9 = vpop.f32.mrb[19].mxu1  ;;  %v1590_v10 = vpop.f32.mrb[23].mxu0  ;;  %v1391_v12 = vmul.f32 -1.442695, %v658_v11 }
 0x3f6   :  { %v1403_v11 = vld [vmem:[%s2119_s0 + $0x1e] sm:$0x3] }
 0x3f7   :  { %1727 = vpow2.f32 %v1390_v8 }
 0x3f8   :  { %1729 = vpow2.f32 %v1391_v12 }
 0x3fa   :  { %v699_v13 = vpop.f32.mrb[20].mxu1 }
 0x3fb   :  { %v1597_v14 = vpop.f32.mrb[21].mxu1  ;;  %v700_v21 = vadd.f32 %v1877_v30, %v699_v13 }
 0x3fc   :  { %v702_v15 = vpop.f32.mrb[22].mxu1 }
 0x3fd   :  { %v1598_v16 = vpop.f32.mrb[23].mxu1  ;;  %v1404_v15 = vld [vmem:[%s2119_s0 + $0x20] sm:$0x3] }
 0x401   :  { %v1728_v17 = vpop.eup %1727 }
 0x402   :  { %v655_v18 = vadd.f32 1.0, %v1728_v17  ;;  %v1730_v19 = vpop.eup %1729 }
 0x403   :  { %v662_v20 = vadd.f32 1.0, %v1730_v19 }
 0x404   :  { %1731 = vrcp.f32 %v655_v18 }
 0x405   :  { %1733 = vrcp.f32 %v662_v20 }
 0x40e   :  { %v1732_v22 = vpop.eup %1731 }
 0x40f   :  { %v705_v24 = vmul.f32 %v1732_v22, %v700_v21  ;;  %v1734_v26 = vpop.eup %1733 }
 0x410   :  { %v708_v27 = vsub.f32 1.0, %v1734_v26  ;;  %v710_v29 = vmul.f32 %v1734_v26, %v554_v54 }
 0x411   :  { %v706_v25 = vadd.f32 %v1387_v23, %v705_v24 }
 0x413   :  { %1735 = vtanh.f32 %v706_v25 }
 0x41d   :  { %v1736_v28 = vpop.eup %1735 }
 0x41e   :  { %v709_v31 = vmul.f32 %v1736_v28, %v708_v27 }
 0x420   :  { %v711_v32 = vadd.f32 %v710_v29, %v709_v31 }
 0x422   :  { %1393 = vst.msk [vmem:[%s2122_s3 + $0x6] sm:$0x3] %vm74_vm0, %v711_v32  ;;  %v718_v33 = vpack.c.bf16 %v711_v32, %v711_v32 }
 0x424   :  { %1604 = vmatmul.mubr.msk.bf16.vlgmr.msra.gmra.mrb[24].mxu0 %vm84_vm2, %v718_v33  ;;  %1612 = vmatmul.mubr.msk.bf16.vlgmr.msra.gmra.mrb[24].mxu1 %vm84_vm2, %v718_v33 }
 0x425   :  { %1616 = vmatpush3.bf16.msra.mxu0 %v1824_v4  ;;  %1619 = vmatprep.mubr.msk.bf16.mxu0 %vm1780_vm1, %v1779_v6 }
 0x426   :  { %1617 = vmatprep.subr.bf16.mxu0 %v1779_v6  ;;  %1624 = vmatpush3.bf16.msra.mxu1 %v1804_v0 }
 0x427   :  { %1625 = vmatprep.subr.bf16.mxu1 %v1779_v6  ;;  %1627 = vmatprep.mubr.msk.bf16.mxu1 %vm1780_vm1, %v1779_v6 }
 0x429   :  { %1618 = vmatpush3.bf16.msra.mxu0 %v1829_v5 }
 0x42a   :  { %1631 = vmatprep.subr.bf16.mxu0 %v1779_v6  ;;  %1626 = vmatpush3.bf16.msra.mxu1 %v1809_v1 }
 0x42b   :  { %1639 = vmatprep.subr.bf16.mxu1 %v1779_v6 }
 0x42c   :  { %1620 = vmatmul.mubr.msk.bf16.vlgmr.msra.gmra.mrb[28].mxu0 %vm84_vm2, %v718_v33 }
 0x42d   :  { %1632 = vmatpush3.bf16.msra.mxu0 %v1814_v2  ;;  %1635 = vmatprep.mubr.msk.bf16.mxu0 %vm1780_vm1, %v1779_v6 }
 0x42e   :  { %1633 = vmatprep.subr.bf16.mxu0 %v1779_v6 }
 0x431   :  { %1634 = vmatpush3.bf16.msra.mxu0 %v1819_v3 }
 0x432   :  { %1647 = vmatprep.subr.bf16.mxu0 %v1779_v6 }
 0x4f7   :  { %v758_v35 = vpop.f32.mrb[24].mxu0  ;;  %v800_v36 = vpop.f32.mrb[24].mxu1 }
 0x4f8   :  { %v808_v37 = vadd.f32 %v1394_v34, %v758_v35  ;;  %v1605_v39 = vpop.f32.mrb[25].mxu0  ;;  %v1613_v40 = vpop.f32.mrb[25].mxu1  ;;  %v815_v46 = vadd.f32 %v1395_v38, %v800_v36  ;;  %v1405_v36 = vld [vmem:[%s2119_s0 + $0x22] sm:$0x3] }
 0x4f9   :  { %v761_v41 = vpop.f32.mrb[26].mxu0  ;;  %v803_v42 = vpop.f32.mrb[26].mxu1 }
 0x4fa   :  { %v1399_v43 = vmul.f32 -1.442695, %v808_v37  ;;  %v1606_v44 = vpop.f32.mrb[27].mxu0  ;;  %v1614_v45 = vpop.f32.mrb[27].mxu1  ;;  %v1400_v47 = vmul.f32 -1.442695, %v815_v46 }
 0x4fc   :  { %1737 = vpow2.f32 %v1399_v43 }
 0x4fd   :  { %1739 = vpow2.f32 %v1400_v47 }
 0x4ff   :  { %v856_v48 = vpop.f32.mrb[28].mxu0 }
 0x500   :  { %v1621_v49 = vpop.f32.mrb[29].mxu0  ;;  %v857_v56 = vadd.f32 %v1877_v30, %v856_v48  ;;  %v1413_v48 = vld [vmem:[%s2119_s0 + $0x26] sm:$0x3] }
 0x501   :  { %v859_v50 = vpop.f32.mrb[30].mxu0 }
 0x502   :  { %v1622_v51 = vpop.f32.mrb[31].mxu0 }
 0x506   :  { %v1738_v52 = vpop.eup %1737 }
 0x507   :  { %v812_v53 = vadd.f32 1.0, %v1738_v52  ;;  %v1740_v54 = vpop.eup %1739 }
 0x508   :  { %v819_v55 = vadd.f32 1.0, %v1740_v54 }
 0x509   :  { %1741 = vrcp.f32 %v812_v53 }
 0x50a   :  { %1743 = vrcp.f32 %v819_v55 }
 0x513   :  { %v1742_v57 = vpop.eup %1741 }
 0x514   :  { %v862_v59 = vmul.f32 %v1742_v57, %v857_v56  ;;  %v1744_v61 = vpop.eup %1743 }
 0x515   :  { %v865_v62 = vsub.f32 1.0, %v1744_v61  ;;  %v867_v7 = vmul.f32 %v1744_v61, %v711_v32 }
 0x516   :  { %v863_v60 = vadd.f32 %v1396_v58, %v862_v59 }
 0x518   :  { %1745 = vtanh.f32 %v863_v60 }
 0x522   :  { %v1746_v63 = vpop.eup %1745 }
 0x523   :  { %v866_v8 = vmul.f32 %v1746_v63, %v865_v62 }
 0x525   :  { %v868_v9 = vadd.f32 %v867_v7, %v866_v8 }
 0x527   :  { %1402 = vst.msk [vmem:[%s2122_s3 + $0x8] sm:$0x3] %vm74_vm0, %v868_v9  ;;  %v875_v10 = vpack.c.bf16 %v868_v9, %v868_v9 }
 0x529   :  { %1628 = vmatmul.mubr.msk.bf16.vlgmr.msra.gmra.mrb[28].mxu1 %vm84_vm2, %v875_v10  ;;  %1636 = vmatmul.mubr.msk.bf16.vlgmr.msra.gmra.mrb[32].mxu0 %vm84_vm2, %v875_v10 }
 0x52a   :  { %1640 = vmatpush3.bf16.msra.mxu1 %v1824_v4  ;;  %1643 = vmatprep.mubr.msk.bf16.mxu1 %vm1780_vm1, %v1779_v6 }
 0x52b   :  { %1641 = vmatprep.subr.bf16.mxu1 %v1779_v6  ;;  %1648 = vmatpush3.bf16.msra.mxu0 %v1804_v0 }
 0x52c   :  { %1649 = vmatprep.subr.bf16.mxu0 %v1779_v6  ;;  %1651 = vmatprep.mubr.msk.bf16.mxu0 %vm1780_vm1, %v1779_v6 }
 0x52e   :  { %1642 = vmatpush3.bf16.msra.mxu1 %v1829_v5 }
 0x52f   :  { %1655 = vmatprep.subr.bf16.mxu1 %v1779_v6  ;;  %1650 = vmatpush3.bf16.msra.mxu0 %v1809_v1 }
 0x530   :  { %1663 = vmatprep.subr.bf16.mxu0 %v1779_v6 }
 0x531   :  { %1644 = vmatmul.mubr.msk.bf16.vlgmr.msra.gmra.mrb[32].mxu1 %vm84_vm2, %v875_v10 }
 0x532   :  { %1656 = vmatpush3.bf16.msra.mxu1 %v1814_v2  ;;  %1659 = vmatprep.mubr.msk.bf16.mxu1 %vm1780_vm1, %v1779_v6 }
 0x533   :  { %1657 = vmatprep.subr.bf16.mxu1 %v1779_v6 }
 0x536   :  { %1658 = vmatpush3.bf16.msra.mxu1 %v1819_v3 }
 0x537   :  { %1671 = vmatprep.subr.bf16.mxu1 %v1779_v6 }
 0x5fc   :  { %v915_v12 = vpop.f32.mrb[28].mxu1  ;;  %v957_v13 = vpop.f32.mrb[32].mxu0 }
 0x5fd   :  { %v965_v14 = vadd.f32 %v1403_v11, %v915_v12  ;;  %v1629_v16 = vpop.f32.mrb[29].mxu1  ;;  %v1637_v17 = vpop.f32.mrb[33].mxu0  ;;  %v972_v23 = vadd.f32 %v1404_v15, %v957_v13 }
 0x5fe   :  { %v918_v18 = vpop.f32.mrb[30].mxu1  ;;  %v960_v19 = vpop.f32.mrb[34].mxu0 }
 0x5ff   :  { %v1408_v20 = vmul.f32 -1.442695, %v965_v14  ;;  %v1630_v21 = vpop.f32.mrb[31].mxu1  ;;  %v1638_v22 = vpop.f32.mrb[35].mxu0  ;;  %v1409_v24 = vmul.f32 -1.442695, %v972_v23 }
 0x600   :  { %v1421_v19 = vld [vmem:[%s2119_s0 + $0x2a] sm:$0x3] }
 0x601   :  { %1747 = vpow2.f32 %v1408_v20 }
 0x602   :  { %1749 = vpow2.f32 %v1409_v24 }
 0x604   :  { %v1013_v25 = vpop.f32.mrb[32].mxu1 }
 0x605   :  { %v1645_v26 = vpop.f32.mrb[33].mxu1  ;;  %v1014_v34 = vadd.f32 %v1877_v30, %v1013_v25 }
 0x606   :  { %v1016_v27 = vpop.f32.mrb[34].mxu1 }
 0x607   :  { %v1646_v28 = vpop.f32.mrb[35].mxu1 }
 0x60b   :  { %v1748_v29 = vpop.eup %1747 }
 0x60c   :  { %v969_v31 = vadd.f32 1.0, %v1748_v29  ;;  %v1750_v32 = vpop.eup %1749 }
 0x60d   :  { %v976_v33 = vadd.f32 1.0, %v1750_v32 }
 0x60e   :  { %1751 = vrcp.f32 %v969_v31 }
 0x60f   :  { %1753 = vrcp.f32 %v976_v33 }
 0x618   :  { %v1752_v35 = vpop.eup %1751 }
 0x619   :  { %v1019_v37 = vmul.f32 %v1752_v35, %v1014_v34  ;;  %v1754_v39 = vpop.eup %1753 }
 0x61a   :  { %v1022_v40 = vsub.f32 1.0, %v1754_v39  ;;  %v1024_v42 = vmul.f32 %v1754_v39, %v868_v9  ;;  %v1414_v9 = vld [vmem:[%s2119_s0 + $0x28] sm:$0x3] }
 0x61b   :  { %v1020_v38 = vadd.f32 %v1405_v36, %v1019_v37 }
 0x61d   :  { %1755 = vtanh.f32 %v1020_v38 }
 0x627   :  { %v1756_v41 = vpop.eup %1755 }
 0x628   :  { %v1023_v43 = vmul.f32 %v1756_v41, %v1022_v40  ;;  %v1423_v41 = vld [vmem:[%s2119_s0 + $0x2e] sm:$0x3] }
 0x62a   :  { %v1025_v44 = vadd.f32 %v1024_v42, %v1023_v43 }
 0x62c   :  { %1411 = vst.msk [vmem:[%s2122_s3 + $0xa] sm:$0x3] %vm74_vm0, %v1025_v44  ;;  %v1032_v45 = vpack.c.bf16 %v1025_v44, %v1025_v44 }
 0x62e   :  { %1652 = vmatmul.mubr.msk.bf16.vlgmr.msra.gmra.mrb[36].mxu0 %vm84_vm2, %v1032_v45  ;;  %1660 = vmatmul.mubr.msk.bf16.vlgmr.msra.gmra.mrb[36].mxu1 %vm84_vm2, %v1032_v45 }
 0x62f   :  { %1664 = vmatpush3.bf16.msra.mxu0 %v1824_v4  ;;  %1667 = vmatprep.mubr.msk.bf16.mxu0 %vm1780_vm1, %v1779_v6 }
 0x630   :  { %1665 = vmatprep.subr.bf16.mxu0 %v1779_v6  ;;  %1672 = vmatpush3.bf16.msra.mxu1 %v1804_v0  ;;  %v1412_v0 = vld [vmem:[%s2119_s0 + $0x24] sm:$0x3] }
 0x631   :  { %1673 = vmatprep.subr.bf16.mxu1 %v1779_v6  ;;  %1675 = vmatprep.mubr.msk.bf16.mxu1 %vm1780_vm1, %v1779_v6 }
 0x633   :  { %1666 = vmatpush3.bf16.msra.mxu0 %v1829_v5 }
 0x634   :  { %1679 = vmatprep.subr.bf16.mxu0 %v1779_v6  ;;  %1674 = vmatpush3.bf16.msra.mxu1 %v1809_v1 }
 0x635   :  { %1687 = vmatprep.subr.bf16.mxu1 %v1779_v6 }
 0x636   :  { %1668 = vmatmul.mubr.msk.bf16.vlgmr.msra.gmra.mrb[40].mxu0 %vm84_vm2, %v1032_v45 }
 0x637   :  { %1680 = vmatpush3.bf16.msra.mxu0 %v1814_v2  ;;  %1683 = vmatprep.mubr.msk.bf16.mxu0 %vm1780_vm1, %v1779_v6 }
 0x638   :  { %1681 = vmatprep.subr.bf16.mxu0 %v1779_v6 }
 0x63b   :  { %1682 = vmatpush3.bf16.msra.mxu0 %v1819_v3 }
 0x701   :  { %v1072_v46 = vpop.f32.mrb[36].mxu0  ;;  %v1114_v47 = vpop.f32.mrb[36].mxu1 }
 0x702   :  { %v1122_v1 = vadd.f32 %v1412_v0, %v1072_v46  ;;  %v1653_v49 = vpop.f32.mrb[37].mxu0  ;;  %v1661_v2 = vpop.f32.mrb[37].mxu1  ;;  %v1129_v55 = vadd.f32 %v1413_v48, %v1114_v47 }
 0x703   :  { %v1075_v50 = vpop.f32.mrb[38].mxu0  ;;  %v1117_v51 = vpop.f32.mrb[38].mxu1 }
 0x704   :  { %v1417_v52 = vmul.f32 -1.442695, %v1122_v1  ;;  %v1654_v53 = vpop.f32.mrb[39].mxu0  ;;  %v1662_v54 = vpop.f32.mrb[39].mxu1  ;;  %v1418_v3 = vmul.f32 -1.442695, %v1129_v55 }
 0x706   :  { %1757 = vpow2.f32 %v1417_v52 }
 0x707   :  { %1759 = vpow2.f32 %v1418_v3 }
 0x709   :  { %v1170_v56 = vpop.f32.mrb[40].mxu0 }
 0x70a   :  { %v1669_v57 = vpop.f32.mrb[41].mxu0  ;;  %v1171_v7 = vadd.f32 %v1877_v30, %v1170_v56 }
 0x70b   :  { %v1173_v58 = vpop.f32.mrb[42].mxu0 }
 0x70c   :  { %v1670_v59 = vpop.f32.mrb[43].mxu0 }
 0x710   :  { %v1758_v60 = vpop.eup %1757 }
 0x711   :  { %v1126_v61 = vadd.f32 1.0, %v1758_v60  ;;  %v1760_v62 = vpop.eup %1759 }
 0x712   :  { %v1133_v63 = vadd.f32 1.0, %v1760_v62 }
 0x713   :  { %1761 = vrcp.f32 %v1126_v61 }
 0x714   :  { %1763 = vrcp.f32 %v1133_v63 }
 0x71d   :  { %v1762_v8 = vpop.eup %1761 }
 0x71e   :  { %v1176_v10 = vmul.f32 %v1762_v8, %v1171_v7  ;;  %v1764_v12 = vpop.eup %1763 }
 0x71f   :  { %v1179_v13 = vsub.f32 1.0, %v1764_v12  ;;  %v1181_v15 = vmul.f32 %v1764_v12, %v1025_v44 }
 0x720   :  { %v1177_v11 = vadd.f32 %v1414_v9, %v1176_v10 }
 0x722   :  { %1765 = vtanh.f32 %v1177_v11 }
 0x72c   :  { %v1766_v14 = vpop.eup %1765 }
 0x72d   :  { %v1180_v16 = vmul.f32 %v1766_v14, %v1179_v13 }
 0x72f   :  { %v1182_v17 = vadd.f32 %v1181_v15, %v1180_v16 }
 0x731   :  { %1420 = vst.msk [vmem:[%s2122_s3 + $0xc] sm:$0x3] %vm74_vm0, %v1182_v17  ;;  %v1189_v18 = vpack.c.bf16 %v1182_v17, %v1182_v17 }
 0x733   :  { %1676 = vmatmul.mubr.msk.bf16.vlgmr.msra.gmra.mrb[40].mxu1 %vm84_vm2, %v1189_v18  ;;  %1684 = vmatmul.mubr.msk.bf16.vlgmr.msra.gmra.mrb[44].mxu0 %vm84_vm2, %v1189_v18 }
 0x734   :  { %1688 = vmatpush3.bf16.msra.mxu1 %v1824_v4  ;;  %1691 = vmatprep.mubr.msk.bf16.mxu1 %vm1780_vm1, %v1779_v6  ;;  %v1422_v4 = vld [vmem:[%s2119_s0 + $0x2c] sm:$0x3] }
 0x735   :  { %1689 = vmatprep.subr.bf16.mxu1 %v1779_v6 }
 0x738   :  { %1690 = vmatpush3.bf16.msra.mxu1 %v1829_v5 }
 0x73b   :  { %1692 = vmatmul.mubr.msk.bf16.vlgmr.msra.gmra.mrb[44].mxu1 %vm84_vm2, %v1189_v18 }
 0x806   :  { %v1229_v20 = vpop.f32.mrb[40].mxu1  ;;  %v1271_v21 = vpop.f32.mrb[44].mxu0 }
 0x807   :  { %v1279_v22 = vadd.f32 %v1421_v19, %v1229_v20  ;;  %v1677_v23 = vpop.f32.mrb[41].mxu1  ;;  %v1685_v24 = vpop.f32.mrb[45].mxu0  ;;  %v1286_v28 = vadd.f32 %v1422_v4, %v1271_v21 }
 0x808   :  { %v1232_v25 = vpop.f32.mrb[42].mxu1  ;;  %v1274_v26 = vpop.f32.mrb[46].mxu0 }
 0x809   :  { %v1426_v6 = vmul.f32 -1.442695, %v1279_v22  ;;  %v1678_v27 = vpop.f32.mrb[43].mxu1  ;;  %v1686_v5 = vpop.f32.mrb[47].mxu0  ;;  %v1427_v29 = vmul.f32 -1.442695, %v1286_v28 }
 0x80b   :  { %1767 = vpow2.f32 %v1426_v6 }
 0x80c   :  { %1769 = vpow2.f32 %v1427_v29 }
 0x80e   :  { %v1327_v31 = vpop.f32.mrb[44].mxu1 }
 0x80f   :  { %v1693_v32 = vpop.f32.mrb[45].mxu1  ;;  %v1328_v39 = vadd.f32 %v1877_v30, %v1327_v31 }
 0x810   :  { %v1330_v33 = vpop.f32.mrb[46].mxu1 }
 0x811   :  { %v1694_v34 = vpop.f32.mrb[47].mxu1 }
 0x815   :  { %v1768_v35 = vpop.eup %1767 }
 0x816   :  { %v1283_v36 = vadd.f32 1.0, %v1768_v35  ;;  %v1770_v37 = vpop.eup %1769 }
 0x817   :  { %v1290_v38 = vadd.f32 1.0, %v1770_v37 }
 0x818   :  { %1771 = vrcp.f32 %v1283_v36 }
 0x819   :  { %1773 = vrcp.f32 %v1290_v38 }
 0x822   :  { %v1772_v40 = vpop.eup %1771 }
 0x823   :  { %v1333_v42 = vmul.f32 %v1772_v40, %v1328_v39  ;;  %v1774_v44 = vpop.eup %1773 }
 0x824   :  { %v1336_v45 = vsub.f32 1.0, %v1774_v44  ;;  %v1338_v46 = vmul.f32 %v1774_v44, %v1182_v17 }
 0x825   :  { %v1334_v43 = vadd.f32 %v1423_v41, %v1333_v42 }
 0x827   :  { %1775 = vtanh.f32 %v1334_v43 }
 0x831   :  { %v1776_v0 = vpop.eup %1775 }
 0x832   :  { %v1337_v47 = vmul.f32 %v1776_v0, %v1336_v45 }
 0x834   :  { %v1339_v1 = vadd.f32 %v1338_v46, %v1337_v47 }
 0x836   :  { %1429 = vst.msk [vmem:[%s2122_s3 + $0xe] sm:$0x3] %vm74_vm0, %v1339_v1  ;;  %1342 = vst.msk [vmem:[#allocation2] sm:$0x3] %vm74_vm0, %v1339_v1 }
 0x837   :  { %1347 = vsyncmov [#allocation4] }
 0x83a   :  { %s1348_s1 = vpop.sfrf %1347 }
 0x83b   :  { %p1430_p0 = scmp.ne.s32.totalorder %s1348_s1, 0 }
 0x83d   :  { %1352 = shalt.err (%p1430_p0)  }

</bundles_post_ra>
